<compile_context>
chip_gen: v5e
topology: v5e:2x2
jax: 0.10.0
libtpu: 0.0.40
codegen_flags: <defaults>
</compile_context>

<pallas_src>
import math
from types import SimpleNamespace

import numpy as np
import jax
import jax.numpy as jnp
from jax.experimental import pallas as pl
from jax.experimental.pallas import tpu as pltpu


# ----------------------------------------------------------------------------
# host-side helpers (XLA glue)
# ----------------------------------------------------------------------------
def _ru(x, m):
    return ((x + m - 1) // m) * m


def _lane_tile(M, max_tiles=16):
    """Tile the lane (pixel) axis in multiples of 128.  Tiles target up to
    16*128 = 2048 lanes (a (288, 2048) bf16 operand block is ~1.1 MiB, well
    inside even v7x's 64 MiB VMEM double-buffered) and we keep >= 2 grid steps
    whenever M >= 256 so v7x's two TensorCores both get work."""
    n = max(1, -(-M // 128))
    per = max(1, min(max_tiles, n // 2)) if n >= 2 else 1
    tm = per * 128
    return _ru(M, tm), tm


def _pad_lanes(a, Mp):
    M = a.shape[-1]
    return a if M == Mp else jnp.pad(a, ((0, 0), (0, Mp - M)))


def _im2col_t_batched(x_nchw, kh, kw, stride, padding, Kp):
    """NCHW -> per-batch transposed patches (B, Kp, Ho*Wo), bf16.
    K (taps x channels) sits on sublanes, pixels on lanes -> lane-dense GEMMs.
    # TODO(synk): at production resolutions, stream the kh*kw taps through a K
    # grid axis with a VMEM accumulator instead of materializing the 9x patch
    # tensor in HBM."""
    B, C, H, W = x_nchw.shape
    x = jnp.pad(x_nchw, ((0, 0), (0, 0), (padding, padding), (padding, padding)))
    Hp, Wp = H + 2 * padding, W + 2 * padding
    Ho = (Hp - kh) // stride + 1
    Wo = (Wp - kw) // stride + 1
    taps = [x[:, :, di:di + Ho * stride:stride, dj:dj + Wo * stride:stride]
            for di in range(kh) for dj in range(kw)]
    pat = jnp.concatenate(taps, axis=1).reshape(B, kh * kw * C, Ho * Wo)
    K = kh * kw * C
    if Kp > K:
        pat = jnp.pad(pat, ((0, 0), (0, Kp - K), (0, 0)))
    return pat.astype(jnp.bfloat16), Ho, Wo


def _im2col_t(x_nchw, kh, kw, stride, padding, Kp):
    """NCHW -> transposed patches (Kp, B*Ho*Wo); lane order = b*Ho*Wo + i*Wo + j."""
    pat, Ho, Wo = _im2col_t_batched(x_nchw, kh, kw, stride, padding, Kp)
    B = x_nchw.shape[0]
    pat = jnp.transpose(pat, (1, 0, 2)).reshape(Kp, B * Ho * Wo)
    return pat, Ho, Wo


def _conv_w_t(w_oihw, Kp):
    """(Cout, Cin, kh, kw) conv weight -> (Cout, Kp) bf16 transposed-GEMM weight,
    K ordered tap-major to match _im2col_t.  Done ONCE at init."""
    Cout, Cin, kh, kw = w_oihw.shape
    w = jnp.transpose(w_oihw, (0, 2, 3, 1)).reshape(Cout, kh * kw * Cin)
    K = kh * kw * Cin
    if Kp > K:
        w = jnp.pad(w, ((0, 0), (0, Kp - K)))
    return w.astype(jnp.bfloat16)


# ----------------------------------------------------------------------------
# Pallas kernels (bf16 operands, f32 MXU accumulation, channels x pixels out)
# ----------------------------------------------------------------------------
def _tgemm_kernel(act=None, clamp=None):
    """out = [clamp|silu](W @ P + b); W:(N,K), P:(K,tm), b:(N,1)."""
    def kernel(w_ref, p_ref, b_ref, o_ref):
        acc = jnp.dot(w_ref[...], p_ref[...],
                      preferred_element_type=jnp.float32) + b_ref[...]
        if act == "silu":
            acc = acc * jax.nn.sigmoid(acc)
        if clamp is not None:
            acc = jnp.clip(acc, clamp[0], clamp[1])
        o_ref[...] = acc.astype(o_ref.dtype)
    return kernel


def gemm_t(w, p, b, act=None, clamp=None, out_dtype=jnp.float32):
    """Transposed GEMM: w (N,K) bf16, p (K,M) bf16, b (N,1) f32 -> (N,M).
    Lane-tiled, 'parallel' grid (sharded across TCs on v7x)."""
    N, K = w.shape
    M = p.shape[1]
    Mp, tm = _lane_tile(M)
    out = pl.pallas_call(
        _tgemm_kernel(act, clamp),
        out_shape=jax.ShapeDtypeStruct((N, Mp), out_dtype),
        grid=(Mp // tm,),
        in_specs=[
            pl.BlockSpec((N, K), lambda i: (0, 0)),
            pl.BlockSpec((K, tm), lambda i: (0, i)),
            pl.BlockSpec((N, 1), lambda i: (0, 0)),
        ],
        out_specs=pl.BlockSpec((N, tm), lambda i: (0, i)),
        compiler_params=pltpu.CompilerParams(dimension_semantics=("parallel",)),
    )(w, _pad_lanes(p, Mp), b)
    return out if Mp == M else out[:, :M]


def _text_kernel(e_ref, w_ref, b_ref, o_ref):
    """Synthetic text encoder projection: GEMM + bias + SiLU (tiny, one block)."""
    acc = jnp.dot(e_ref[...], w_ref[...],
                  preferred_element_type=jnp.float32) + b_ref[...]
    o_ref[...] = (acc * jax.nn.sigmoid(acc)).astype(o_ref.dtype)


def _encode_sample_kernel(sf, L):
    """VAE encoder conv GEMM fused with the reparameterization sample * sf.
    One concatenated (2L,K) weight -> a single MXU push; the mean/logvar split
    happens in-register along the sublane axis."""
    def kernel(w_ref, p_ref, b_ref, eps_ref, o_ref):
        acc = jnp.dot(w_ref[...], p_ref[...],
                      preferred_element_type=jnp.float32) + b_ref[...]
        mean = acc[:L, :]
        logv = jnp.clip(acc[L:, :], -30.0, 20.0)
        std = jnp.exp(0.5 * logv)
        o_ref[...] = ((mean + std * eps_ref[...]) * sf).astype(o_ref.dtype)
    return kernel


def _convout_ddpm_kernel(c1, c2):
    """UNet conv_out GEMM fused with DDPMScheduler.step at t=999 (prev_t=-1).
    # TODO(synk): DDPM's sqrt(variance)*noise term (variance clamps to 1e-20 on
    # this path, ~1e-10 contribution) is omitted."""
    def kernel(w_ref, p_ref, b_ref, z_ref, o_ref):
        eps = jnp.dot(w_ref[...], p_ref[...],
                      preferred_element_type=jnp.float32) + b_ref[...]
        o_ref[...] = ((z_ref[...] - c1 * eps) * c2).astype(o_ref.dtype)
    return kernel


def _unet_mid_kernel(scale):
    """One fused call per batch element (batch axis sharded across TCs on v7x):
    conv_in GEMM(+SiLU) + constant-timestep-embedding add + cross-attention
    (softmax over the 8 context tokens) + output projection + residual.
    Everything stays channels(sublanes) x pixels(lanes); all dots are plain 2D."""
    def kernel(p_ref, cs_ref, ct_ref, wc_ref, bc_ref, temb_ref,
               wq_ref, wk_ref, wv_ref, wo_ref, bo_ref, o_ref):
        feat = jnp.dot(wc_ref[...], p_ref[...],
                       preferred_element_type=jnp.float32) + bc_ref[...]
        feat = feat * jax.nn.sigmoid(feat)                            # conv_in + SiLU
        x = feat + temb_ref[...]                                      # (H, S)
        xb = x.astype(jnp.bfloat16)
        q = jnp.dot(wq_ref[...], xb, preferred_element_type=jnp.float32)       # (H, S)
        k = jnp.dot(cs_ref[...], wk_ref[...],
                    preferred_element_type=jnp.float32)                         # (SEQ, H)
        v = jnp.dot(wv_ref[...], ct_ref[...],
                    preferred_element_type=jnp.float32)                         # (H, SEQ)
        s = jnp.dot(k.astype(jnp.bfloat16), q.astype(jnp.bfloat16),
                    preferred_element_type=jnp.float32) * scale                 # (SEQ, S)
        m = jnp.max(s, axis=0, keepdims=True)
        p = jnp.exp(s - m)
        l = jnp.sum(p, axis=0, keepdims=True)
        a = jnp.dot(v.astype(jnp.bfloat16), p.astype(jnp.bfloat16),
                    preferred_element_type=jnp.float32)                          # (H, S)
        # approx EUP reciprocal: tiny deviation vs the exact torch softmax divide
        a = a * pl.reciprocal(l, approx=True)
        o = jnp.dot(wo_ref[...], a.astype(jnp.bfloat16),
                    preferred_element_type=jnp.float32) + bo_ref[...]
        o_ref[...] = (x + o).astype(o_ref.dtype)
    return kernel


# ----------------------------------------------------------------------------
# OSEDiff_gen, Pallas edition
# ----------------------------------------------------------------------------
class OSEDiffGenPallas:
    IMG_CH = 3
    LAT_CH = 4
    HID = 32
    CTX = 32
    SEQ = 8
    VOCAB = 256
    SCALING = 0.18215

    def __init__(self, args, key):
        self.args = args
        ks = jax.random.split(key, 16)
        H, C, X, L, V = self.HID, self.CTX, self.IMG_CH, self.LAT_CH, self.VOCAB

        def w_init(k, shape, fan_in):
            return jax.random.normal(k, shape, jnp.float32) / np.sqrt(fan_in)

        # synthetic text encoder  # TODO(synk): replaces CLIPTextModel + AutoTokenizer
        self.text_emb = w_init(ks[0], (V, C), C)
        self.text_w = w_init(ks[1], (C, C), C).astype(jnp.bfloat16)
        self.text_b = jnp.zeros((1, C), jnp.float32)

        # synthetic VAE encoder: stride-2 3x3 conv whose (mean | logvar) outputs
        # are the rows of ONE concatenated (2L, K) transposed-GEMM weight
        self.enc_Kp = _ru(9 * X, 16)
        self.enc_w = _conv_w_t(w_init(ks[2], (2 * L, X, 3, 3), X * 9), self.enc_Kp)
        self.enc_b = jnp.zeros((2 * L, 1), jnp.float32)

        # synthetic UNet: conv_in(+SiLU), cross-attention mid block, conv_out
        self.cin_Kp = _ru(9 * L, 16)
        self.conv_in_w = _conv_w_t(w_init(ks[3], (H, L, 3, 3), L * 9), self.cin_Kp)
        self.conv_in_b = jnp.zeros((H, 1), jnp.float32)
        # attention weights kept in the orientation each in-kernel dot consumes
        self.wq_t = w_init(ks[6], (H, H), H).astype(jnp.bfloat16)   # q^T = wq^T x^T
        self.wk = w_init(ks[7], (C, H), C).astype(jnp.bfloat16)     # k   = ctx  wk
        self.wv_t = w_init(ks[8], (H, C), C).astype(jnp.bfloat16)   # v^T = wv^T ctx^T
        self.wo_t = w_init(ks[9], (H, H), H).astype(jnp.bfloat16)
        self.bo_t = jnp.zeros((H, 1), jnp.float32)
        self.cout_Kp = _ru(9 * H, 16)
        self.conv_out_w = _conv_w_t(w_init(ks[10], (L, H, 3, 3), H * 9), self.cout_Kp)
        self.conv_out_b = jnp.zeros((L, 1), jnp.float32)

        # synthetic VAE decoder: nearest x2 upsample (folded into the patch
        # gather) -> 3x3 conv.  The 1/scaling_factor of vae.decode(x / sf) is
        # folded into the conv weight once (conv is linear in its input).
        self.dec_Kp = _ru(9 * L, 16)
        self.dec_w = _conv_w_t(w_init(ks[11], (X, L, 3, 3), L * 9) / self.SCALING,
                               self.dec_Kp)
        self.dec_b = jnp.zeros((X, 1), jnp.float32)

        # DDPMScheduler (scaled_linear, 1000 train steps), set_timesteps(1), t=999
        betas = np.linspace(0.00085 ** 0.5, 0.012 ** 0.5, 1000, dtype=np.float64) ** 2
        alphas_cumprod = np.cumprod(1.0 - betas)
        a999 = float(alphas_cumprod[999])
        # prev_t = 999 - 1000//1 = -1 => alpha_prod_prev = 1 =>
        #   prev_sample = (sample - sqrt(1 - a999) * eps) / sqrt(a999)
        self.c1 = float(np.sqrt(1.0 - a999))
        self.c2 = float(1.0 / np.sqrt(a999))
        self.timesteps = 999

        # The timestep is the constant 999, so the whole sin/cos embedding plus
        # the 2-layer SiLU MLP is a constant: compute it ONCE here and feed the
        # mid-block kernel a single (H, 1) bias-like vector (hoisted per review).
        half = H // 2
        freqs = np.exp(-math.log(10000.0) * np.arange(half, dtype=np.float64) / half)
        ang = float(self.timesteps) * freqs
        sincos = jnp.asarray(np.concatenate([np.cos(ang), np.sin(ang)])[None, :],
                             jnp.float32)
        t_w1 = w_init(ks[4], (H, H), H)
        t_w2 = w_init(ks[5], (H, H), H)
        t = sincos @ t_w1
        t = t * jax.nn.sigmoid(t)
        t = t @ t_w2
        self.temb = jnp.transpose(t, (1, 0))                           # (H, 1) f32

        # per-call RNG for the VAE reparameterization noise (fresh every forward)
        self._rng = ks[12]

        self._forward_jit = jax.jit(self._forward_impl)

    # -------------------- text encoder --------------------
    def _tokenize(self, caption):
        ids = [ord(ch) % self.VOCAB for ch in caption][:self.SEQ]
        return ids + [0] * (self.SEQ - len(ids))

    def _encode_prompts(self, tok_ids):
        """(n, SEQ) int32 -> (n, SEQ, CTX) f32; ONE fused GEMM for all captions
        (prompt + neg_prompt batches share a single launch)."""
        n = tok_ids.shape[0]
        rows = n * self.SEQ
        e = jnp.take(self.text_emb, tok_ids.reshape(-1), axis=0)       # (rows, CTX)
        Rp = _ru(rows, 16)
        if Rp != rows:
            e = jnp.pad(e, ((0, Rp - rows), (0, 0)))
        out = pl.pallas_call(
            _text_kernel,
            out_shape=jax.ShapeDtypeStruct((Rp, self.CTX), jnp.float32),
            grid=(1,),
            in_specs=[
                pl.BlockSpec((Rp, self.CTX), lambda i: (0, 0)),
                pl.BlockSpec((self.CTX, self.CTX), lambda i: (0, 0)),
                pl.BlockSpec((1, self.CTX), lambda i: (0, 0)),
            ],
            out_specs=pl.BlockSpec((Rp, self.CTX), lambda i: (0, 0)),
        )(e.astype(jnp.bfloat16), self.text_w, self.text_b)
        return out[:rows].reshape(n, self.SEQ, self.CTX)

    # -------------------- VAE encode (conv GEMM + sample fused) ----------------
    def _vae_encode(self, c_t, eps_key):
        B = c_t.shape[0]
        L, Kp = self.LAT_CH, self.enc_Kp
        pat, Ho, Wo = _im2col_t(c_t.astype(jnp.float32), 3, 3, 2, 1, Kp)
        M = B * Ho * Wo
        Mp, tm = _lane_tile(M)
        eps = jax.random.normal(eps_key, (L, Mp), jnp.float32)
        lat = pl.pallas_call(
            _encode_sample_kernel(self.SCALING, L),
            out_shape=jax.ShapeDtypeStruct((L, Mp), jnp.float32),
            grid=(Mp // tm,),
            in_specs=[
                pl.BlockSpec((2 * L, Kp), lambda i: (0, 0)),
                pl.BlockSpec((Kp, tm), lambda i: (0, i)),
                pl.BlockSpec((2 * L, 1), lambda i: (0, 0)),
                pl.BlockSpec((L, tm), lambda i: (0, i)),
            ],
            out_specs=pl.BlockSpec((L, tm), lambda i: (0, i)),
            compiler_params=pltpu.CompilerParams(dimension_semantics=("parallel",)),
        )(self.enc_w, _pad_lanes(pat, Mp), self.enc_b, eps)
        lat = lat if Mp == M else lat[:, :M]
        return lat, Ho, Wo                              # (L, B*Ho*Wo): chans x pixels

    # -------------------- UNet mid block (conv_in + attention fused) -----------
    def _unet_mid(self, lat_nchw, prompt_embeds):
        B, L, h, w = lat_nchw.shape
        H, S, Kp = self.HID, h * w, self.cin_Kp
        pat, _, _ = _im2col_t_batched(lat_nchw, 3, 3, 1, 1, Kp)        # (B, Kp, S)
        ctx_std = prompt_embeds.astype(jnp.bfloat16)                   # (B, SEQ, C)
        ctx_t = jnp.transpose(ctx_std, (0, 2, 1))                      # (B, C, SEQ)
        # TODO(synk): for B == 1, split S across the grid instead of B so both
        # v7x TensorCores stay busy.
        out = pl.pallas_call(
            _unet_mid_kernel(1.0 / math.sqrt(H)),
            out_shape=jax.ShapeDtypeStruct((B, H, S), jnp.bfloat16),
            grid=(B,),
            in_specs=[
                pl.BlockSpec((None, Kp, S), lambda b: (b, 0, 0)),
                pl.BlockSpec((None, self.SEQ, self.CTX), lambda b: (b, 0, 0)),
                pl.BlockSpec((None, self.CTX, self.SEQ), lambda b: (b, 0, 0)),
                pl.BlockSpec((H, Kp), lambda b: (0, 0)),
                pl.BlockSpec((H, 1), lambda b: (0, 0)),
                pl.BlockSpec((H, 1), lambda b: (0, 0)),      # constant timestep emb
                pl.BlockSpec((H, H), lambda b: (0, 0)),
                pl.BlockSpec((self.CTX, H), lambda b: (0, 0)),
                pl.BlockSpec((H, self.CTX), lambda b: (0, 0)),
                pl.BlockSpec((H, H), lambda b: (0, 0)),
                pl.BlockSpec((H, 1), lambda b: (0, 0)),
            ],
            out_specs=pl.BlockSpec((None, H, S), lambda b: (b, 0, 0)),
            compiler_params=pltpu.CompilerParams(dimension_semantics=("parallel",)),
        )(pat, ctx_std, ctx_t, self.conv_in_w, self.conv_in_b, self.temb,
          self.wq_t, self.wk, self.wv_t, self.wo_t, self.bo_t)
        return out.reshape(B, H, h, w)                    # NCHW feature map, bf16

    # -------------------- conv_out GEMM + DDPM step fused -----------------------
    def _conv_out_ddpm(self, feat_nchw, lat_t):
        B, H, h, w = feat_nchw.shape
        L, Kp = self.LAT_CH, self.cout_Kp
        pat, _, _ = _im2col_t(feat_nchw, 3, 3, 1, 1, Kp)               # (Kp, B*h*w)
        M = B * h * w
        Mp, tm = _lane_tile(M)
        out = pl.pallas_call(
            _convout_ddpm_kernel(self.c1, self.c2),
            out_shape=jax.ShapeDtypeStruct((L, Mp), jnp.float32),
            grid=(Mp // tm,),
            in_specs=[
                pl.BlockSpec((L, Kp), lambda i: (0, 0)),
                pl.BlockSpec((Kp, tm), lambda i: (0, i)),
                pl.BlockSpec((L, 1), lambda i: (0, 0)),
                pl.BlockSpec((L, tm), lambda i: (0, i)),
            ],
            out_specs=pl.BlockSpec((L, tm), lambda i: (0, i)),
            compiler_params=pltpu.CompilerParams(dimension_semantics=("parallel",)),
        )(self.conv_out_w, _pad_lanes(pat, Mp), self.conv_out_b,
          _pad_lanes(lat_t, Mp))
        return out if Mp == M else out[:, :M]              # x_denoised, chans x pixels

    # -------------------- VAE decode (upsample folded into patch gather) --------
    def _decode_patches(self, z_nchw, Kp):
        """Patches for the decoder 3x3 conv applied to the nearest-x2 upsample of
        z WITHOUT materializing the upsampled tensor: the (i//2, j//2) source
        indexing and the zero-pad border are folded into per-tap gathers."""
        B, C, h, w = z_nchw.shape
        Ho, Wo = 2 * h, 2 * w
        taps = []
        for di in range(3):
            for dj in range(3):
                iy = np.arange(Ho) + di - 1
                jx = np.arange(Wo) + dj - 1
                my = ((iy >= 0) & (iy < Ho)).astype(np.float32)
                mx = ((jx >= 0) & (jx < Wo)).astype(np.float32)
                ry = (np.clip(iy, 0, Ho - 1) // 2).astype(np.int32)
                rx = (np.clip(jx, 0, Wo - 1) // 2).astype(np.int32)
                t = jnp.take(jnp.take(z_nchw, jnp.asarray(ry), axis=2),
                             jnp.asarray(rx), axis=3)
                mask = jnp.asarray(my[:, None] * mx[None, :], z_nchw.dtype)
                taps.append(t * mask)
        pat = jnp.concatenate(taps, axis=1)                            # (B, 9C, Ho, Wo)
        pat = jnp.transpose(pat, (1, 0, 2, 3)).reshape(9 * C, B * Ho * Wo)
        if Kp > 9 * C:
            pat = jnp.pad(pat, ((0, Kp - 9 * C), (0, 0)))
        return pat.astype(jnp.bfloat16), Ho, Wo

    def _vae_decode(self, xden_nchw):
        B = xden_nchw.shape[0]
        pat, Ho, Wo = self._decode_patches(xden_nchw, self.dec_Kp)
        img = gemm_t(self.dec_w, pat, self.dec_b, clamp=(-1.0, 1.0))   # (3, B*Ho*Wo)
        return jnp.transpose(img.reshape(self.IMG_CH, B, Ho, Wo), (1, 0, 2, 3))

    # -------------------- forward --------------------
    def _forward_impl(self, c_t, tok_all, eps_key):
        B = c_t.shape[0]
        L = self.LAT_CH
        embeds = self._encode_prompts(tok_all)                         # (2B, SEQ, CTX)
        prompt_embeds, neg_prompt_embeds = embeds[:B], embeds[B:]

        lat_t, h, w = self._vae_encode(c_t, eps_key)                   # (L, B*h*w)
        lat_nchw = jnp.transpose(lat_t.reshape(L, B, h, w), (1, 0, 2, 3))

        feat_nchw = self._unet_mid(lat_nchw, prompt_embeds)            # (B, H, h, w)
        xden_t = self._conv_out_ddpm(feat_nchw, lat_t)                 # (L, B*h*w)
        x_denoised = jnp.transpose(xden_t.reshape(L, B, h, w), (1, 0, 2, 3))

        output_image = self._vae_decode(x_denoised)                    # (B, 3, 2h, 2w)
        return output_image, x_denoised, prompt_embeds, neg_prompt_embeds

    def forward(self, c_t, batch):
        toks = [self._tokenize(c)
                for c in list(batch["prompt"]) + list(batch["neg_prompt"])]
        tok_all = jnp.asarray(toks, jnp.int32)
        # fresh reparameterization noise every call (matches torch .sample())
        self._rng, eps_key = jax.random.split(self._rng)
        return self._forward_jit(c_t, tok_all, eps_key)

    __call__ = forward


# ----------------------------------------------------------------------------
if __name__ == "__main__":
    args = SimpleNamespace(lora_rank=4, mixed_precision="fp32",
                           pretrained_model_name_or_path=None)
    key = jax.random.PRNGKey(0)
    k_model, k_data = jax.random.split(key)

    model = OSEDiffGenPallas(args, k_model)

    B = 2
    c_t = jax.random.uniform(k_data, (B, 3, 16, 16), jnp.float32,
                             minval=-1.0, maxval=1.0)
    batch = {"prompt": ["a photo of a cat", "a scenic mountain lake"],
             "neg_prompt": ["blurry, low quality", "noise, artifacts"]}

    out_img, x_den, pe, npe = model.forward(c_t, batch)
    out_img = jax.block_until_ready(out_img)

    assert out_img.shape == (B, 3, 16, 16), out_img.shape
    assert x_den.shape == (B, 4, 8, 8), x_den.shape
    assert pe.shape == (B, model.SEQ, model.CTX), pe.shape
    assert npe.shape == (B, model.SEQ, model.CTX), npe.shape
    assert bool(jnp.all(jnp.isfinite(out_img)))
    assert bool(jnp.all(jnp.isfinite(x_den)))
    assert bool(jnp.all(out_img <= 1.0)) and bool(jnp.all(out_img >= -1.0))
    print("KERNEL_OK")
</pallas_src>

<mosaic_0001>
module attributes {stable_mosaic.version = 11 : i64} {
  func.func @_text_kernel(%arg0: i32, %arg1: memref<32x32xbf16, #tpu.memory_space<vmem>>, %arg2: memref<32x32xbf16, #tpu.memory_space<vmem>>, %arg3: memref<1x32xf32, #tpu.memory_space<vmem>>, %arg4: memref<32x32xf32, #tpu.memory_space<vmem>>) attributes {dimension_semantics = [#tpu.dimension_semantics<arbitrary>], iteration_bounds = array<i64: 1>, scalar_prefetch = 0 : i64, scratch_operands = 0 : i64, tpu.core_type = #tpu.core_type<tc>, window_params = [{pipeline_mode = #tpu.pipeline_mode<synchronous>, transform_indices = @transform_0, window_bounds = array<i64: 32, 32>}, {pipeline_mode = #tpu.pipeline_mode<synchronous>, transform_indices = @transform_1, window_bounds = array<i64: 32, 32>}, {pipeline_mode = #tpu.pipeline_mode<synchronous>, transform_indices = @transform_2, window_bounds = array<i64: 1, 32>}, {pipeline_mode = #tpu.pipeline_mode<synchronous>, transform_indices = @transform_3, window_bounds = array<i64: 32, 32>}]} {
    %c0 = arith.constant 0 : index
    %c0_0 = arith.constant 0 : index
    %0 = vector.load %arg1[%c0, %c0_0] : memref<32x32xbf16, #tpu.memory_space<vmem>>, vector<32x32xbf16>
    %c0_1 = arith.constant 0 : index
    %c0_2 = arith.constant 0 : index
    %1 = vector.load %arg2[%c0_1, %c0_2] : memref<32x32xbf16, #tpu.memory_space<vmem>>, vector<32x32xbf16>
    %cst = arith.constant dense<0.000000e+00> : vector<32x32xf32>
    %2 = tpu.matmul %0, %1, %cst {dimension_numbers = #tpu.dot_dimension_numbers<[1], [0], [0], [1], [0, 0, 1, 1], [], []>} : vector<32x32xbf16>, vector<32x32xbf16>, vector<32x32xf32> -> vector<32x32xf32>
    %c0_3 = arith.constant 0 : index
    %c0_4 = arith.constant 0 : index
    %3 = vector.load %arg3[%c0_3, %c0_4] : memref<1x32xf32, #tpu.memory_space<vmem>>, vector<1x32xf32>
    %4 = vector.broadcast %3 : vector<1x32xf32> to vector<32x32xf32>
    %5 = arith.addf %2, %4 : vector<32x32xf32>
    %6 = arith.negf %5 : vector<32x32xf32>
    %7 = math.exp %6 : vector<32x32xf32>
    %cst_5 = arith.constant 1.000000e+00 : f32
    %8 = vector.broadcast %cst_5 : f32 to vector<32x32xf32>
    %9 = arith.addf %8, %7 : vector<32x32xf32>
    %10 = arith.divf %8, %9 : vector<32x32xf32>
    %11 = arith.mulf %5, %10 : vector<32x32xf32>
    %c0_6 = arith.constant 0 : index
    %c0_7 = arith.constant 0 : index
    %12 = vector.load %arg4[%c0_6, %c0_7] : memref<32x32xf32, #tpu.memory_space<vmem>>, vector<32x32xf32>
    tpu.vector_store %arg4[%c0_6, %c0_7], %11 {strides = array<i32>} : memref<32x32xf32, #tpu.memory_space<vmem>>, vector<32x32xf32>,
    return
  }
  func.func @transform_0(%arg0: i32) -> (i32, i32) {
    %c0_i32 = arith.constant 0 : i32
    %c0_i32_0 = arith.constant 0 : i32
    %c0_i32_1 = arith.constant 0 : i32
    return %c0_i32, %c0_i32_0 : i32, i32
  }
  func.func @transform_1(%arg0: i32) -> (i32, i32) {
    %c0_i32 = arith.constant 0 : i32
    %c0_i32_0 = arith.constant 0 : i32
    %c0_i32_1 = arith.constant 0 : i32
    return %c0_i32, %c0_i32_0 : i32, i32
  }
  func.func @transform_2(%arg0: i32) -> (i32, i32) {
    %c0_i32 = arith.constant 0 : i32
    %c0_i32_0 = arith.constant 0 : i32
    %c0_i32_1 = arith.constant 0 : i32
    return %c0_i32, %c0_i32_0 : i32, i32
  }
  func.func @transform_3(%arg0: i32) -> (i32, i32) {
    %c0_i32 = arith.constant 0 : i32
    %c0_i32_0 = arith.constant 0 : i32
    %c0_i32_1 = arith.constant 0 : i32
    return %c0_i32, %c0_i32_0 : i32, i32
  }
}

module attributes {stable_mosaic.version = 11 : i64} {
  func.func @kernel(%arg0: i32, %arg1: memref<8x32xbf16, #tpu.memory_space<vmem>>, %arg2: memref<32x128xbf16, #tpu.memory_space<vmem>>, %arg3: memref<8x1xf32, #tpu.memory_space<vmem>>, %arg4: memref<4x128xf32, #tpu.memory_space<vmem>>, %arg5: memref<4x128xf32, #tpu.memory_space<vmem>>) attributes {dimension_semantics = [#tpu.dimension_semantics<parallel>], iteration_bounds = array<i64: 1>, scalar_prefetch = 0 : i64, scratch_operands = 0 : i64, tpu.core_type = #tpu.core_type<tc>, window_params = [{pipeline_mode = #tpu.pipeline_mode<synchronous>, transform_indices = @transform_0, window_bounds = array<i64: 8, 32>}, {transform_indices = @transform_1, window_bounds = array<i64: 32, 128>}, {pipeline_mode = #tpu.pipeline_mode<synchronous>, transform_indices = @transform_2, window_bounds = array<i64: 8, 1>}, {transform_indices = @transform_3, window_bounds = array<i64: 4, 128>}, {transform_indices = @transform_4, window_bounds = array<i64: 4, 128>}]} {
    %c0 = arith.constant 0 : index
    %c0_0 = arith.constant 0 : index
    %0 = vector.load %arg1[%c0, %c0_0] : memref<8x32xbf16, #tpu.memory_space<vmem>>, vector<8x32xbf16>
    %c0_1 = arith.constant 0 : index
    %c0_2 = arith.constant 0 : index
    %1 = vector.load %arg2[%c0_1, %c0_2] : memref<32x128xbf16, #tpu.memory_space<vmem>>, vector<32x128xbf16>
    %cst = arith.constant dense<0.000000e+00> : vector<8x128xf32>
    %2 = tpu.matmul %0, %1, %cst {dimension_numbers = #tpu.dot_dimension_numbers<[1], [0], [0], [1], [0, 0, 1, 1], [], []>} : vector<8x32xbf16>, vector<32x128xbf16>, vector<8x128xf32> -> vector<8x128xf32>
    %c0_3 = arith.constant 0 : index
    %c0_4 = arith.constant 0 : index
    %3 = vector.load %arg3[%c0_3, %c0_4] : memref<8x1xf32, #tpu.memory_space<vmem>>, vector<8x1xf32>
    %4 = vector.broadcast %3 : vector<8x1xf32> to vector<8x128xf32>
    %5 = arith.addf %2, %4 : vector<8x128xf32>
    %6 = vector.extract_strided_slice %5 {offsets = [0, 0], sizes = [4, 128], strides = [1, 1]} : vector<8x128xf32> to vector<4x128xf32>
    %7 = vector.extract_strided_slice %5 {offsets = [4, 0], sizes = [4, 128], strides = [1, 1]} : vector<8x128xf32> to vector<4x128xf32>
    %cst_5 = arith.constant -3.000000e+01 : f32
    %cst_6 = arith.constant 2.000000e+01 : f32
    %8 = vector.broadcast %cst_5 : f32 to vector<4x128xf32>
    %9 = arith.maximumf %8, %7 : vector<4x128xf32>
    %10 = vector.broadcast %cst_6 : f32 to vector<4x128xf32>
    %11 = arith.minimumf %10, %9 : vector<4x128xf32>
    %cst_7 = arith.constant 5.000000e-01 : f32
    %12 = vector.broadcast %cst_7 : f32 to vector<4x128xf32>
    %13 = arith.mulf %12, %11 : vector<4x128xf32>
    %14 = math.exp %13 : vector<4x128xf32>
    %c0_8 = arith.constant 0 : index
    %c0_9 = arith.constant 0 : index
    %15 = vector.load %arg4[%c0_8, %c0_9] : memref<4x128xf32, #tpu.memory_space<vmem>>, vector<4x128xf32>
    %16 = arith.mulf %14, %15 : vector<4x128xf32>
    %17 = arith.addf %6, %16 : vector<4x128xf32>
    %cst_10 = arith.constant 1.821500e-01 : f32
    %18 = vector.broadcast %cst_10 : f32 to vector<4x128xf32>
    %19 = arith.mulf %17, %18 : vector<4x128xf32>
    %c0_11 = arith.constant 0 : index
    %c0_12 = arith.constant 0 : index
    %20 = vector.load %arg5[%c0_11, %c0_12] : memref<4x128xf32, #tpu.memory_space<vmem>>, vector<4x128xf32>
    tpu.vector_store %arg5[%c0_11, %c0_12], %19 {strides = array<i32>} : memref<4x128xf32, #tpu.memory_space<vmem>>, vector<4x128xf32>,
    return
  }
  func.func @transform_0(%arg0: i32) -> (i32, i32) {
    %c0_i32 = arith.constant 0 : i32
    %c0_i32_0 = arith.constant 0 : i32
    %c0_i32_1 = arith.constant 0 : i32
    return %c0_i32, %c0_i32_0 : i32, i32
  }
  func.func @transform_1(%arg0: i32) -> (i32, i32) {
    %c0_i32 = arith.constant 0 : i32
    %c0_i32_0 = arith.constant 0 : i32
    return %c0_i32, %arg0 : i32, i32
  }
  func.func @transform_2(%arg0: i32) -> (i32, i32) {
    %c0_i32 = arith.constant 0 : i32
    %c0_i32_0 = arith.constant 0 : i32
    %c0_i32_1 = arith.constant 0 : i32
    return %c0_i32, %c0_i32_0 : i32, i32
  }
  func.func @transform_3(%arg0: i32) -> (i32, i32) {
    %c0_i32 = arith.constant 0 : i32
    %c0_i32_0 = arith.constant 0 : i32
    return %c0_i32, %arg0 : i32, i32
  }
  func.func @transform_4(%arg0: i32) -> (i32, i32) {
    %c0_i32 = arith.constant 0 : i32
    %c0_i32_0 = arith.constant 0 : i32
    return %c0_i32, %arg0 : i32, i32
  }
}

module attributes {stable_mosaic.version = 11 : i64} {
  func.func @kernel(%arg0: i32, %arg1: memref<1x48x64xbf16, #tpu.memory_space<vmem>>, %arg2: memref<1x8x32xbf16, #tpu.memory_space<vmem>>, %arg3: memref<1x32x8xbf16, #tpu.memory_space<vmem>>, %arg4: memref<32x48xbf16, #tpu.memory_space<vmem>>, %arg5: memref<32x1xf32, #tpu.memory_space<vmem>>, %arg6: memref<32x1xf32, #tpu.memory_space<vmem>>, %arg7: memref<32x32xbf16, #tpu.memory_space<vmem>>, %arg8: memref<32x32xbf16, #tpu.memory_space<vmem>>, %arg9: memref<32x32xbf16, #tpu.memory_space<vmem>>, %arg10: memref<32x32xbf16, #tpu.memory_space<vmem>>, %arg11: memref<32x1xf32, #tpu.memory_space<vmem>>, %arg12: memref<1x32x64xbf16, #tpu.memory_space<vmem>>) attributes {dimension_semantics = [#tpu.dimension_semantics<parallel>], iteration_bounds = array<i64: 2>, scalar_prefetch = 0 : i64, scratch_operands = 0 : i64, tpu.core_type = #tpu.core_type<tc>, window_params = [{transform_indices = @transform_0, window_bounds = array<i64: 1, 48, 64>}, {transform_indices = @transform_1, window_bounds = array<i64: 1, 8, 32>}, {transform_indices = @transform_2, window_bounds = array<i64: 1, 32, 8>}, {pipeline_mode = #tpu.pipeline_mode<synchronous>, transform_indices = @transform_3, window_bounds = array<i64: 32, 48>}, {pipeline_mode = #tpu.pipeline_mode<synchronous>, transform_indices = @transform_4, window_bounds = array<i64: 32, 1>}, {pipeline_mode = #tpu.pipeline_mode<synchronous>, transform_indices = @transform_5, window_bounds = array<i64: 32, 1>}, {pipeline_mode = #tpu.pipeline_mode<synchronous>, transform_indices = @transform_6, window_bounds = array<i64: 32, 32>}, {pipeline_mode = #tpu.pipeline_mode<synchronous>, transform_indices = @transform_7, window_bounds = array<i64: 32, 32>}, {pipeline_mode = #tpu.pipeline_mode<synchronous>, transform_indices = @transform_8, window_bounds = array<i64: 32, 32>}, {pipeline_mode = #tpu.pipeline_mode<synchronous>, transform_indices = @transform_9, window_bounds = array<i64: 32, 32>}, {pipeline_mode = #tpu.pipeline_mode<synchronous>, transform_indices = @transform_10, window_bounds = array<i64: 32, 1>}, {transform_indices = @transform_11, window_bounds = array<i64: 1, 32, 64>}]} {
    %c0 = arith.constant 0 : index
    %c0_0 = arith.constant 0 : index
    %0 = vector.load %arg4[%c0, %c0_0] : memref<32x48xbf16, #tpu.memory_space<vmem>>, vector<32x48xbf16>
    %c0_1 = arith.constant 0 : index
    %c0_2 = arith.constant 0 : index
    %c0_3 = arith.constant 0 : index
    %1 = vector.load %arg1[%c0_1, %c0_2, %c0_3] : memref<1x48x64xbf16, #tpu.memory_space<vmem>>, vector<1x48x64xbf16>
    %2 = vector.shape_cast %1 : vector<1x48x64xbf16> to vector<48x64xbf16>
    %cst = arith.constant dense<0.000000e+00> : vector<32x64xf32>
    %3 = tpu.matmul %0, %2, %cst {dimension_numbers = #tpu.dot_dimension_numbers<[1], [0], [0], [1], [0, 0, 1, 1], [], []>} : vector<32x48xbf16>, vector<48x64xbf16>, vector<32x64xf32> -> vector<32x64xf32>
    %c0_4 = arith.constant 0 : index
    %c0_5 = arith.constant 0 : index
    %4 = vector.load %arg5[%c0_4, %c0_5] : memref<32x1xf32, #tpu.memory_space<vmem>>, vector<32x1xf32>
    %5 = vector.broadcast %4 : vector<32x1xf32> to vector<32x64xf32>
    %6 = arith.addf %3, %5 : vector<32x64xf32>
    %7 = arith.negf %6 : vector<32x64xf32>
    %8 = math.exp %7 : vector<32x64xf32>
    %cst_6 = arith.constant 1.000000e+00 : f32
    %9 = vector.broadcast %cst_6 : f32 to vector<32x64xf32>
    %10 = arith.addf %9, %8 : vector<32x64xf32>
    %11 = arith.divf %9, %10 : vector<32x64xf32>
    %12 = arith.mulf %6, %11 : vector<32x64xf32>
    %c0_7 = arith.constant 0 : index
    %c0_8 = arith.constant 0 : index
    %13 = vector.load %arg6[%c0_7, %c0_8] : memref<32x1xf32, #tpu.memory_space<vmem>>, vector<32x1xf32>
    %14 = vector.broadcast %13 : vector<32x1xf32> to vector<32x64xf32>
    %15 = arith.addf %12, %14 : vector<32x64xf32>
    %16 = arith.truncf %15 : vector<32x64xf32> to vector<32x64xbf16>
    %c0_9 = arith.constant 0 : index
    %c0_10 = arith.constant 0 : index
    %17 = vector.load %arg7[%c0_9, %c0_10] : memref<32x32xbf16, #tpu.memory_space<vmem>>, vector<32x32xbf16>
    %cst_11 = arith.constant dense<0.000000e+00> : vector<32x64xf32>
    %18 = tpu.matmul %17, %16, %cst_11 {dimension_numbers = #tpu.dot_dimension_numbers<[1], [0], [0], [1], [0, 0, 1, 1], [], []>} : vector<32x32xbf16>, vector<32x64xbf16>, vector<32x64xf32> -> vector<32x64xf32>
    %c0_12 = arith.constant 0 : index
    %c0_13 = arith.constant 0 : index
    %c0_14 = arith.constant 0 : index
    %19 = vector.load %arg2[%c0_12, %c0_13, %c0_14] : memref<1x8x32xbf16, #tpu.memory_space<vmem>>, vector<1x8x32xbf16>
    %20 = vector.shape_cast %19 : vector<1x8x32xbf16> to vector<8x32xbf16>
    %c0_15 = arith.constant 0 : index
    %c0_16 = arith.constant 0 : index
    %21 = vector.load %arg8[%c0_15, %c0_16] : memref<32x32xbf16, #tpu.memory_space<vmem>>, vector<32x32xbf16>
    %cst_17 = arith.constant dense<0.000000e+00> : vector<8x32xf32>
    %22 = tpu.matmul %20, %21, %cst_17 {dimension_numbers = #tpu.dot_dimension_numbers<[1], [0], [0], [1], [0, 0, 1, 1], [], []>} : vector<8x32xbf16>, vector<32x32xbf16>, vector<8x32xf32> -> vector<8x32xf32>
    %c0_18 = arith.constant 0 : index
    %c0_19 = arith.constant 0 : index
    %23 = vector.load %arg9[%c0_18, %c0_19] : memref<32x32xbf16, #tpu.memory_space<vmem>>, vector<32x32xbf16>
    %c0_20 = arith.constant 0 : index
    %c0_21 = arith.constant 0 : index
    %c0_22 = arith.constant 0 : index
    %24 = vector.load %arg3[%c0_20, %c0_21, %c0_22] : memref<1x32x8xbf16, #tpu.memory_space<vmem>>, vector<1x32x8xbf16>
    %25 = vector.shape_cast %24 : vector<1x32x8xbf16> to vector<32x8xbf16>
    %cst_23 = arith.constant dense<0.000000e+00> : vector<32x8xf32>
    %26 = tpu.matmul %23, %25, %cst_23 {dimension_numbers = #tpu.dot_dimension_numbers<[1], [0], [0], [1], [0, 0, 1, 1], [], []>} : vector<32x32xbf16>, vector<32x8xbf16>, vector<32x8xf32> -> vector<32x8xf32>
    %27 = arith.truncf %22 : vector<8x32xf32> to vector<8x32xbf16>
    %28 = arith.truncf %18 : vector<32x64xf32> to vector<32x64xbf16>
    %cst_24 = arith.constant dense<0.000000e+00> : vector<8x64xf32>
    %29 = tpu.matmul %27, %28, %cst_24 {dimension_numbers = #tpu.dot_dimension_numbers<[1], [0], [0], [1], [0, 0, 1, 1], [], []>} : vector<8x32xbf16>, vector<32x64xbf16>, vector<8x64xf32> -> vector<8x64xf32>
    %cst_25 = arith.constant 0.176776692 : f32
    %30 = vector.broadcast %cst_25 : f32 to vector<8x64xf32>
    %31 = arith.mulf %29, %30 : vector<8x64xf32>
    %cst_26 = arith.constant dense<0xFF800000> : vector<64xf32>
    %32 = vector.multi_reduction <maximumf>, %31, %cst_26 [0] : vector<8x64xf32> to vector<64xf32>
    %33 = vector.shape_cast %32 : vector<64xf32> to vector<1x64xf32>
    %34 = vector.broadcast %33 : vector<1x64xf32> to vector<8x64xf32>
    %35 = arith.subf %31, %34 : vector<8x64xf32>
    %36 = math.exp %35 : vector<8x64xf32>
    %cst_27 = arith.constant dense<0.000000e+00> : vector<64xf32>
    %37 = vector.multi_reduction <add>, %36, %cst_27 [0] : vector<8x64xf32> to vector<64xf32>
    %38 = vector.shape_cast %37 : vector<64xf32> to vector<1x64xf32>
    %39 = arith.truncf %26 : vector<32x8xf32> to vector<32x8xbf16>
    %40 = arith.truncf %36 : vector<8x64xf32> to vector<8x64xbf16>
    %cst_28 = arith.constant dense<0.000000e+00> : vector<32x64xf32>
    %41 = tpu.matmul %39, %40, %cst_28 {dimension_numbers = #tpu.dot_dimension_numbers<[1], [0], [0], [1], [0, 0, 1, 1], [], []>} : vector<32x8xbf16>, vector<8x64xbf16>, vector<32x64xf32> -> vector<32x64xf32>
    %42 = tpu.reciprocal %38 {approx = true} : vector<1x64xf32> -> vector<1x64xf32>
    %43 = vector.broadcast %42 : vector<1x64xf32> to vector<32x64xf32>
    %44 = arith.mulf %41, %43 : vector<32x64xf32>
    %c0_29 = arith.constant 0 : index
    %c0_30 = arith.constant 0 : index
    %45 = vector.load %arg10[%c0_29, %c0_30] : memref<32x32xbf16, #tpu.memory_space<vmem>>, vector<32x32xbf16>
    %46 = arith.truncf %44 : vector<32x64xf32> to vector<32x64xbf16>
    %cst_31 = arith.constant dense<0.000000e+00> : vector<32x64xf32>
    %47 = tpu.matmul %45, %46, %cst_31 {dimension_numbers = #tpu.dot_dimension_numbers<[1], [0], [0], [1], [0, 0, 1, 1], [], []>} : vector<32x32xbf16>, vector<32x64xbf16>, vector<32x64xf32> -> vector<32x64xf32>
    %c0_32 = arith.constant 0 : index
    %c0_33 = arith.constant 0 : index
    %48 = vector.load %arg11[%c0_32, %c0_33] : memref<32x1xf32, #tpu.memory_space<vmem>>, vector<32x1xf32>
    %49 = vector.broadcast %48 : vector<32x1xf32> to vector<32x64xf32>
    %50 = arith.addf %47, %49 : vector<32x64xf32>
    %51 = arith.addf %15, %50 : vector<32x64xf32>
    %52 = arith.truncf %51 : vector<32x64xf32> to vector<32x64xbf16>
    %c0_34 = arith.constant 0 : index
    %c0_35 = arith.constant 0 : index
    %c0_36 = arith.constant 0 : index
    %53 = vector.load %arg12[%c0_34, %c0_35, %c0_36] : memref<1x32x64xbf16, #tpu.memory_space<vmem>>, vector<1x32x64xbf16>
    %54 = vector.shape_cast %53 : vector<1x32x64xbf16> to vector<32x64xbf16>
    %55 = vector.shape_cast %52 : vector<32x64xbf16> to vector<1x32x64xbf16>
    tpu.vector_store %arg12[%c0_34, %c0_35, %c0_36], %55 {strides = array<i32>} : memref<1x32x64xbf16, #tpu.memory_space<vmem>>, vector<1x32x64xbf16>,
    return
  }
  func.func @transform_0(%arg0: i32) -> (i32, i32, i32) {
    %c0_i32 = arith.constant 0 : i32
    %c0_i32_0 = arith.constant 0 : i32
    %c0_i32_1 = arith.constant 0 : i32
    return %arg0, %c0_i32, %c0_i32_0 : i32, i32, i32
  }
  func.func @transform_1(%arg0: i32) -> (i32, i32, i32) {
    %c0_i32 = arith.constant 0 : i32
    %c0_i32_0 = arith.constant 0 : i32
    %c0_i32_1 = arith.constant 0 : i32
    return %arg0, %c0_i32, %c0_i32_0 : i32, i32, i32
  }
  func.func @transform_2(%arg0: i32) -> (i32, i32, i32) {
    %c0_i32 = arith.constant 0 : i32
    %c0_i32_0 = arith.constant 0 : i32
    %c0_i32_1 = arith.constant 0 : i32
    return %arg0, %c0_i32, %c0_i32_0 : i32, i32, i32
  }
  func.func @transform_3(%arg0: i32) -> (i32, i32) {
    %c0_i32 = arith.constant 0 : i32
    %c0_i32_0 = arith.constant 0 : i32
    %c0_i32_1 = arith.constant 0 : i32
    return %c0_i32, %c0_i32_0 : i32, i32
  }
  func.func @transform_4(%arg0: i32) -> (i32, i32) {
    %c0_i32 = arith.constant 0 : i32
    %c0_i32_0 = arith.constant 0 : i32
    %c0_i32_1 = arith.constant 0 : i32
    return %c0_i32, %c0_i32_0 : i32, i32
  }
  func.func @transform_5(%arg0: i32) -> (i32, i32) {
    %c0_i32 = arith.constant 0 : i32
    %c0_i32_0 = arith.constant 0 : i32
    %c0_i32_1 = arith.constant 0 : i32
    return %c0_i32, %c0_i32_0 : i32, i32
  }
  func.func @transform_6(%arg0: i32) -> (i32, i32) {
    %c0_i32 = arith.constant 0 : i32
    %c0_i32_0 = arith.constant 0 : i32
    %c0_i32_1 = arith.constant 0 : i32
    return %c0_i32, %c0_i32_0 : i32, i32
  }
  func.func @transform_7(%arg0: i32) -> (i32, i32) {
    %c0_i32 = arith.constant 0 : i32
    %c0_i32_0 = arith.constant 0 : i32
    %c0_i32_1 = arith.constant 0 : i32
    return %c0_i32, %c0_i32_0 : i32, i32
  }
  func.func @transform_8(%arg0: i32) -> (i32, i32) {
    %c0_i32 = arith.constant 0 : i32
    %c0_i32_0 = arith.constant 0 : i32
    %c0_i32_1 = arith.constant 0 : i32
    return %c0_i32, %c0_i32_0 : i32, i32
  }
  func.func @transform_9(%arg0: i32) -> (i32, i32) {
    %c0_i32 = arith.constant 0 : i32
    %c0_i32_0 = arith.constant 0 : i32
    %c0_i32_1 = arith.constant 0 : i32
    return %c0_i32, %c0_i32_0 : i32, i32
  }
  func.func @transform_10(%arg0: i32) -> (i32, i32) {
    %c0_i32 = arith.constant 0 : i32
    %c0_i32_0 = arith.constant 0 : i32
    %c0_i32_1 = arith.constant 0 : i32
    return %c0_i32, %c0_i32_0 : i32, i32
  }
  func.func @transform_11(%arg0: i32) -> (i32, i32, i32) {
    %c0_i32 = arith.constant 0 : i32
    %c0_i32_0 = arith.constant 0 : i32
    %c0_i32_1 = arith.constant 0 : i32
    return %arg0, %c0_i32, %c0_i32_0 : i32, i32, i32
  }
}

module attributes {stable_mosaic.version = 11 : i64} {
  func.func @kernel(%arg0: i32, %arg1: memref<4x288xbf16, #tpu.memory_space<vmem>>, %arg2: memref<288x128xbf16, #tpu.memory_space<vmem>>, %arg3: memref<4x1xf32, #tpu.memory_space<vmem>>, %arg4: memref<4x128xf32, #tpu.memory_space<vmem>>, %arg5: memref<4x128xf32, #tpu.memory_space<vmem>>) attributes {dimension_semantics = [#tpu.dimension_semantics<parallel>], iteration_bounds = array<i64: 1>, scalar_prefetch = 0 : i64, scratch_operands = 0 : i64, tpu.core_type = #tpu.core_type<tc>, window_params = [{pipeline_mode = #tpu.pipeline_mode<synchronous>, transform_indices = @transform_0, window_bounds = array<i64: 4, 288>}, {transform_indices = @transform_1, window_bounds = array<i64: 288, 128>}, {pipeline_mode = #tpu.pipeline_mode<synchronous>, transform_indices = @transform_2, window_bounds = array<i64: 4, 1>}, {transform_indices = @transform_3, window_bounds = array<i64: 4, 128>}, {transform_indices = @transform_4, window_bounds = array<i64: 4, 128>}]} {
    %c0 = arith.constant 0 : index
    %c0_0 = arith.constant 0 : index
    %0 = vector.load %arg1[%c0, %c0_0] : memref<4x288xbf16, #tpu.memory_space<vmem>>, vector<4x288xbf16>
    %c0_1 = arith.constant 0 : index
    %c0_2 = arith.constant 0 : index
    %1 = vector.load %arg2[%c0_1, %c0_2] : memref<288x128xbf16, #tpu.memory_space<vmem>>, vector<288x128xbf16>
    %cst = arith.constant dense<0.000000e+00> : vector<4x128xf32>
    %2 = tpu.matmul %0, %1, %cst {dimension_numbers = #tpu.dot_dimension_numbers<[1], [0], [0], [1], [0, 0, 1, 1], [], []>} : vector<4x288xbf16>, vector<288x128xbf16>, vector<4x128xf32> -> vector<4x128xf32>
    %c0_3 = arith.constant 0 : index
    %c0_4 = arith.constant 0 : index
    %3 = vector.load %arg3[%c0_3, %c0_4] : memref<4x1xf32, #tpu.memory_space<vmem>>, vector<4x1xf32>
    %4 = vector.broadcast %3 : vector<4x1xf32> to vector<4x128xf32>
    %5 = arith.addf %2, %4 : vector<4x128xf32>
    %c0_5 = arith.constant 0 : index
    %c0_6 = arith.constant 0 : index
    %6 = vector.load %arg4[%c0_5, %c0_6] : memref<4x128xf32, #tpu.memory_space<vmem>>, vector<4x128xf32>
    %cst_7 = arith.constant 0.997667253 : f32
    %7 = vector.broadcast %cst_7 : f32 to vector<4x128xf32>
    %8 = arith.mulf %7, %5 : vector<4x128xf32>
    %9 = arith.subf %6, %8 : vector<4x128xf32>
    %cst_8 = arith.constant 14.6488132 : f32
    %10 = vector.broadcast %cst_8 : f32 to vector<4x128xf32>
    %11 = arith.mulf %9, %10 : vector<4x128xf32>
    %c0_9 = arith.constant 0 : index
    %c0_10 = arith.constant 0 : index
    %12 = vector.load %arg5[%c0_9, %c0_10] : memref<4x128xf32, #tpu.memory_space<vmem>>, vector<4x128xf32>
    tpu.vector_store %arg5[%c0_9, %c0_10], %11 {strides = array<i32>} : memref<4x128xf32, #tpu.memory_space<vmem>>, vector<4x128xf32>,
    return
  }
  func.func @transform_0(%arg0: i32) -> (i32, i32) {
    %c0_i32 = arith.constant 0 : i32
    %c0_i32_0 = arith.constant 0 : i32
    %c0_i32_1 = arith.constant 0 : i32
    return %c0_i32, %c0_i32_0 : i32, i32
  }
  func.func @transform_1(%arg0: i32) -> (i32, i32) {
    %c0_i32 = arith.constant 0 : i32
    %c0_i32_0 = arith.constant 0 : i32
    return %c0_i32, %arg0 : i32, i32
  }
  func.func @transform_2(%arg0: i32) -> (i32, i32) {
    %c0_i32 = arith.constant 0 : i32
    %c0_i32_0 = arith.constant 0 : i32
    %c0_i32_1 = arith.constant 0 : i32
    return %c0_i32, %c0_i32_0 : i32, i32
  }
  func.func @transform_3(%arg0: i32) -> (i32, i32) {
    %c0_i32 = arith.constant 0 : i32
    %c0_i32_0 = arith.constant 0 : i32
    return %c0_i32, %arg0 : i32, i32
  }
  func.func @transform_4(%arg0: i32) -> (i32, i32) {
    %c0_i32 = arith.constant 0 : i32
    %c0_i32_0 = arith.constant 0 : i32
    return %c0_i32, %arg0 : i32, i32
  }
}

module attributes {stable_mosaic.version = 11 : i64} {
  func.func @kernel(%arg0: i32, %arg1: memref<3x48xbf16, #tpu.memory_space<vmem>>, %arg2: memref<48x256xbf16, #tpu.memory_space<vmem>>, %arg3: memref<3x1xf32, #tpu.memory_space<vmem>>, %arg4: memref<3x256xf32, #tpu.memory_space<vmem>>) attributes {dimension_semantics = [#tpu.dimension_semantics<parallel>], iteration_bounds = array<i64: 2>, scalar_prefetch = 0 : i64, scratch_operands = 0 : i64, tpu.core_type = #tpu.core_type<tc>, window_params = [{pipeline_mode = #tpu.pipeline_mode<synchronous>, transform_indices = @transform_0, window_bounds = array<i64: 3, 48>}, {transform_indices = @transform_1, window_bounds = array<i64: 48, 256>}, {pipeline_mode = #tpu.pipeline_mode<synchronous>, transform_indices = @transform_2, window_bounds = array<i64: 3, 1>}, {transform_indices = @transform_3, window_bounds = array<i64: 3, 256>}]} {
    %c0 = arith.constant 0 : index
    %c0_0 = arith.constant 0 : index
    %0 = vector.load %arg1[%c0, %c0_0] : memref<3x48xbf16, #tpu.memory_space<vmem>>, vector<3x48xbf16>
    %c0_1 = arith.constant 0 : index
    %c0_2 = arith.constant 0 : index
    %1 = vector.load %arg2[%c0_1, %c0_2] : memref<48x256xbf16, #tpu.memory_space<vmem>>, vector<48x256xbf16>
    %cst = arith.constant dense<0.000000e+00> : vector<3x256xf32>
    %2 = tpu.matmul %0, %1, %cst {dimension_numbers = #tpu.dot_dimension_numbers<[1], [0], [0], [1], [0, 0, 1, 1], [], []>} : vector<3x48xbf16>, vector<48x256xbf16>, vector<3x256xf32> -> vector<3x256xf32>
    %c0_3 = arith.constant 0 : index
    %c0_4 = arith.constant 0 : index
    %3 = vector.load %arg3[%c0_3, %c0_4] : memref<3x1xf32, #tpu.memory_space<vmem>>, vector<3x1xf32>
    %4 = vector.broadcast %3 : vector<3x1xf32> to vector<3x256xf32>
    %5 = arith.addf %2, %4 : vector<3x256xf32>
    %cst_5 = arith.constant -1.000000e+00 : f32
    %cst_6 = arith.constant 1.000000e+00 : f32
    %6 = vector.broadcast %cst_5 : f32 to vector<3x256xf32>
    %7 = arith.maximumf %6, %5 : vector<3x256xf32>
    %8 = vector.broadcast %cst_6 : f32 to vector<3x256xf32>
    %9 = arith.minimumf %8, %7 : vector<3x256xf32>
    %c0_7 = arith.constant 0 : index
    %c0_8 = arith.constant 0 : index
    %10 = vector.load %arg4[%c0_7, %c0_8] : memref<3x256xf32, #tpu.memory_space<vmem>>, vector<3x256xf32>
    tpu.vector_store %arg4[%c0_7, %c0_8], %9 {strides = array<i32>} : memref<3x256xf32, #tpu.memory_space<vmem>>, vector<3x256xf32>,
    return
  }
  func.func @transform_0(%arg0: i32) -> (i32, i32) {
    %c0_i32 = arith.constant 0 : i32
    %c0_i32_0 = arith.constant 0 : i32
    %c0_i32_1 = arith.constant 0 : i32
    return %c0_i32, %c0_i32_0 : i32, i32
  }
  func.func @transform_1(%arg0: i32) -> (i32, i32) {
    %c0_i32 = arith.constant 0 : i32
    %c0_i32_0 = arith.constant 0 : i32
    return %c0_i32, %arg0 : i32, i32
  }
  func.func @transform_2(%arg0: i32) -> (i32, i32) {
    %c0_i32 = arith.constant 0 : i32
    %c0_i32_0 = arith.constant 0 : i32
    %c0_i32_1 = arith.constant 0 : i32
    return %c0_i32, %c0_i32_0 : i32, i32
  }
  func.func @transform_3(%arg0: i32) -> (i32, i32) {
    %c0_i32 = arith.constant 0 : i32
    %c0_i32_0 = arith.constant 0 : i32
    return %c0_i32, %arg0 : i32, i32
  }
}

</mosaic_0001>

<bundles_post_ra>
// kernel: _forward_impl.6
= control target key start
LH: loop header
LB: loop body
LE: loop exit
PB: predicated region body
PF: predicated region fallthrough
CT: control target
= control target key end

     0   :  { %vm49_vm0 = vcmask 261120   ;;  %s269_s1 = inlined_call_operand.vmem [shape: bf16[32,32], index: 1, kind: input, shape index: {}]   ;;  %s270_s2 = inlined_call_operand.vmem [shape: f32[1,32], index: 2, kind: input, shape index: {}]   ;;  %s271_s0 = inlined_call_operand.vmem [shape: bf16[32,32], index: 0, kind: input, shape index: {}]   ;;  %s272_s3 = inlined_call_operand.vmem [shape: f32[32,32], index: 3, kind: output, shape index: {}]  }
   0x1   :  { %v188_v0 = vld [vmem:[%s269_s1 + $0x8] sm:$0xff]  ;;  %v187_v1 = vld [vmem:[%s269_s1] sm:$0xff] }
   0x2   :  { %62 = vmatpush.bf16.msra.mxu0 %v188_v0  ;;  %189 = vmatpush.bf16.msra.mxu1 %v188_v0  ;;  %v185_v2 = vld [vmem:[%s271_s0] sm:$0xff]  ;;  %v186_v3 = vld [vmem:[%s271_s0 + $0x8] sm:$0xff] }
   0x3   :  { %v191_v4 = vld [vmem:[%s270_s2] ss:$0 sm:$0xff] }
   0x6   :  { %63 = vmatpush.bf16.msra.mxu0 %v187_v1  ;;  %190 = vmatpush.bf16.msra.mxu1 %v187_v1 }
   0x9   :  { %179 = vmatmul.msk.bf16.vlgmr.msra.gmra.mxu0 %vm49_vm0, %v185_v2  ;;  %180 = vmatmul.msk.bf16.vlgmr.msra.gmra.mxu1 %vm49_vm0, %v186_v3 }
  0x86   :  { %v65_v5 = vpop.f32.mrf.mxu0  ;;  %v70_v6 = vpop.f32.mrf.mxu1 }
  0x87   :  { %v66_v7 = vadd.f32 %v191_v4, %v65_v5  ;;  %v71_v8 = vadd.f32 %v191_v4, %v70_v6 }
  0x89   :  { %v181_v9 = vmul.f32 -1.442695, %v66_v7  ;;  %v183_v10 = vmul.f32 -1.442695, %v71_v8 }
  0x8b   :  { %192 = vpow2.f32 %v181_v9 }
  0x8c   :  { %194 = vpow2.f32 %v183_v10 }
  0x8e   :  { %v67_v11 = vpop.f32.mrf.mxu0  ;;  %v72_v12 = vpop.f32.mrf.mxu1 }
  0x8f   :  { %v245_v13 = vadd.f32 %v191_v4, %v67_v11  ;;  %v247_v14 = vadd.f32 %v191_v4, %v72_v12 }
  0x91   :  { %v193_v15 = vpop.eup %192  ;;  %v182_v16 = vmul.f32 -1.442695, %v245_v13  ;;  %v184_v19 = vmul.f32 -1.442695, %v247_v14 }
  0x92   :  { %v195_v17 = vpop.eup %194  ;;  %v87_v18 = vadd.f32 1.0, %v193_v15 }
  0x93   :  { %v89_v20 = vadd.f32 1.0, %v195_v17  ;;  %196 = vpow2.f32 %v182_v16 }
  0x94   :  { %198 = vrcp.f32 %v87_v18  ;;  %v100_v30 = vand.u32 2147483647, %v87_v18  ;;  %v102_v31 = vand.u32 2147483648, %v87_v18  ;;  %vm96_vm3 = vweird.f32 %v87_v18 }
  0x95   :  { %200 = vrcp.f32 %v89_v20  ;;  %v132_v34 = vand.u32 2147483648, %v89_v20  ;;  %v130_v36 = vand.u32 2147483647, %v89_v20  ;;  %vm126_vm5 = vweird.f32 %v89_v20 }
  0x96   :  { %202 = vpow2.f32 %v184_v19  ;;  %v103_v39 = vor.u32 1.1754944e-38, %v102_v31  ;;  %vm101_vm6 = vcmp.eq.f32.partialorder %v100_v30, 8.507059e+37 }
  0x97   :  { %v133_v42 = vor.u32 1.1754944e-38, %v132_v34  ;;  %vm131_vm8 = vcmp.eq.f32.partialorder %v130_v36, 8.507059e+37 }
  0x99   :  { %v197_v21 = vpop.eup %196 }
  0x9a   :  { %v199_v22 = vpop.eup %198  ;;  %v88_v23 = vadd.f32 1.0, %v197_v21 }
  0x9b   :  { %v201_v24 = vpop.eup %200  ;;  %v92_v25 = vmul.f32 %v199_v22, %v87_v18  ;;  %vm97_vm1 = vweird.f32 %v199_v22 }
  0x9c   :  { %v203_v26 = vpop.eup %202  ;;  %v122_v27 = vmul.f32 %v201_v24, %v89_v20  ;;  %204 = vrcp.f32 %v88_v23  ;;  %vm127_vm2 = vweird.f32 %v201_v24  ;;  %vm98_vm4 = vmor %vm96_vm3, %vm97_vm1  ;;  %v117_v51 = vand.u32 2147483648, %v88_v23 }
  0x9d   :  { %v93_v28 = vsub.f32 1.0, %v92_v25  ;;  %v90_v29 = vadd.f32 1.0, %v203_v26  ;;  %vm128_vm7 = vmor %vm126_vm5, %vm127_vm2  ;;  %v115_v54 = vand.u32 2147483647, %v88_v23  ;;  %vm111_vm10 = vweird.f32 %v88_v23 }
  0x9e   :  { %v123_v32 = vsub.f32 1.0, %v122_v27  ;;  %v118_v58 = vor.u32 1.1754944e-38, %v117_v51 }
  0x9f   :  { %v94_v33 = vmul.f32 %v199_v22, %v93_v28  ;;  %206 = vrcp.f32 %v90_v29  ;;  %v147_v57 = vand.u32 2147483648, %v90_v29  ;;  %v145_v60 = vand.u32 2147483647, %v90_v29 }
  0xa0   :  { %v124_v35 = vmul.f32 %v201_v24, %v123_v32  ;;  %vm116_vm13 = vcmp.eq.f32.partialorder %v115_v54, 8.507059e+37  ;;  %vm141_vm14 = vweird.f32 %v90_v29 }
  0xa1   :  { %v95_v37 = vadd.f32 %v199_v22, %v94_v33  ;;  %v148_v1 = vor.u32 1.1754944e-38, %v147_v57  ;;  %vm146_vm1 = vcmp.eq.f32.partialorder %v145_v60, 8.507059e+37 }
  0xa2   :  { %v205_v38 = vpop.eup %204  ;;  %v125_v40 = vadd.f32 %v201_v24, %v124_v35 }
  0xa3   :  { %v99_v41 = vsel %vm98_vm4, %v199_v22, %v95_v37  ;;  %v107_v43 = vmul.f32 %v205_v38, %v88_v23  ;;  %vm112_vm9 = vweird.f32 %v205_v38 }
  0xa4   :  { %v104_v44 = vsel %vm101_vm6, %v103_v39, %v99_v41  ;;  %v129_v45 = vsel %vm128_vm7, %v201_v24, %v125_v40  ;;  %vm113_vm11 = vmor %vm111_vm10, %vm112_vm9 }
  0xa5   :  { %v207_v46 = vpop.eup %206  ;;  %v151_v47 = vmul.f32 %v104_v44, %v66_v7  ;;  %v134_v48 = vsel %vm131_vm8, %v133_v42, %v129_v45  ;;  %v108_v49 = vsub.f32 1.0, %v107_v43 }
  0xa6   :  { %v153_v50 = vmul.f32 %v134_v48, %v71_v8  ;;  %v137_v52 = vmul.f32 %v207_v46, %v90_v29  ;;  %vm142_vm12 = vweird.f32 %v207_v46 }
  0xa7   :  { %155 = vst.msk [vmem:[%s272_s3] sm:$0xff] %vm49_vm0, %v151_v47  ;;  %v109_v53 = vmul.f32 %v205_v38, %v108_v49  ;;  %vm143_vm15 = vmor %vm141_vm14, %vm142_vm12 }
  0xa8   :  { %157 = vst.msk [vmem:[%s272_s3 + $0x10] sm:$0xff] %vm49_vm0, %v153_v50  ;;  %v138_v55 = vsub.f32 1.0, %v137_v52 }
  0xa9   :  { %v110_v56 = vadd.f32 %v205_v38, %v109_v53 }
  0xaa   :  { %v139_v59 = vmul.f32 %v207_v46, %v138_v55 }
  0xab   :  { %v114_v61 = vsel %vm113_vm11, %v205_v38, %v110_v56 }
  0xac   :  { %v119_v62 = vsel %vm116_vm13, %v118_v58, %v114_v61  ;;  %v140_v63 = vadd.f32 %v207_v46, %v139_v59 }
  0xad   :  { %v152_v0 = vmul.f32 %v119_v62, %v245_v13 }
  0xae   :  { %v144_v2 = vsel %vm143_vm15, %v207_v46, %v140_v63 }
  0xaf   :  { %156 = vst.msk [vmem:[%s272_s3 + $0x8] sm:$0xff] %vm49_vm0, %v152_v0  ;;  %v149_v3 = vsel %vm146_vm1, %v148_v1, %v144_v2 }
  0xb0   :  { %v154_v4 = vmul.f32 %v149_v3, %v247_v14 }
  0xb2   :  { %158 = vst.msk [vmem:[%s272_s3 + $0x18] sm:$0xff] %vm49_vm0, %v154_v4 }

// kernel: _forward_impl.5
= control target key start
LH: loop header
LB: loop body
LE: loop exit
PB: predicated region body
PF: predicated region fallthrough
CT: control target
= control target key end

     0   :  { %v93_v1 = vmov 0   ;;  %vm41_vm0 = vcmask 261120   ;;  %s137_s1 = inlined_call_operand.vmem [shape: bf16[32,128], index: 1, kind: input, shape index: {}]   ;;  %s138_s2 = inlined_call_operand.vmem [shape: f32[8,1], index: 2, kind: input, shape index: {}]   ;;  %s139_s0 = inlined_call_operand.vmem [shape: bf16[8,32], index: 0, kind: input, shape index: {}]   ;;  %s140_s3 = inlined_call_operand.vmem [shape: f32[4,128], index: 3, kind: input, shape index: {}]   ;;  %s141_s4 = inlined_call_operand.vmem [shape: f32[4,128], index: 4, kind: output, shape index: {}]  }
   0x1   :  { %v88_v0 = vld [vmem:[%s137_s1 + $0x8] sm:$0xff]  ;;  %90 = vset.pattern.permute.xlu0 %v93_v1  ;;  %v23_v2 = vld [vmem:[%s138_s2] sm:$0xff] }
   0x2   :  { %51 = vmatpush.bf16.msra.mxu0 %v88_v0  ;;  %v87_v3 = vld [vmem:[%s137_s1] sm:$0xff]  ;;  %26 = vperm.xlu0 %90, %v23_v2  }
   0x3   :  { %v18_v4 = vld [vmem:[%s139_s0] sm:$0xf] }
   0x4   :  { %v63_v13 = vld [vmem:[%s140_s3] sm:$0xf] }
   0x5   :  { %v65_v14 = vrot.slane %v63_v13, 4 }
   0x6   :  { %52 = vmatpush.bf16.msra.mxu0 %v87_v3 }
   0x9   :  { %86 = vmatmul.msk.bf16.vlgmr.msra.gmra.mxu0 %vm41_vm0, %v18_v4 }
  0x74   :  { %v27_v5 = vpop.permute.xlu0 %26 }
  0x86   :  { %v54_v6 = vpop.f32.mrf.mxu0 }
  0x87   :  { %v55_v7 = vadd.f32 %v54_v6, %v27_v5 }
  0x89   :  { %v58_v8 = vmax.f32 %v55_v7, -30.0 }
  0x8b   :  { %v59_v9 = vmin.f32 %v58_v8, 20.0 }
  0x8d   :  { %v60_v10 = vmul.f32 0.5, %v59_v9 }
  0x8e   :  { %v56_v11 = vpop.f32.mrf.mxu0 }
  0x8f   :  { %v61_v12 = vmul.f32 1.442695, %v60_v10 }
  0x91   :  { %91 = vpow2.f32 %v61_v12 }
  0x97   :  { %v92_v15 = vpop.eup %91 }
  0x98   :  { %v67_v16 = vmul.f32 %v92_v15, %v65_v14 }
  0x9a   :  { %v69_v17 = vrot.slane %v67_v16, 4 }
  0x9c   :  { %v71_v18 = vadd.f32 %v69_v17, %v55_v7 }
  0x9e   :  { %v72_v19 = vmul.f32 0.18215, %v71_v18 }
  0xa0   :  { %73 = vst [vmem:[%s141_s4] sm:$0xf] %v72_v19 }

// kernel: _forward_impl.7
= control target key start
LH: loop header
LB: loop body
LE: loop exit
PB: predicated region body
PF: predicated region fallthrough
CT: control target
= control target key end

     0   :  { %s1194_s17 = smov 0   ;;  %s1391_s0 = inlined_call_operand.vmem [shape: bf16[2,48,64], index: 0, kind: input, shape index: {}]   ;;  %s1392_s1 = inlined_call_operand.vmem [shape: bf16[2,8,32], index: 1, kind: input, shape index: {}]   ;;  %s1393_s2 = inlined_call_operand.vmem [shape: bf16[2,32,8], index: 2, kind: input, shape index: {}]   ;;  %s1394_s3 = inlined_call_operand.vmem [shape: bf16[32,48], index: 3, kind: input, shape index: {}]   ;;  %s1395_s4 = inlined_call_operand.vmem [shape: f32[32,1], index: 4, kind: input, shape index: {}, may-alias: {4,10}]   ;;  %s1396_s5 = inlined_call_operand.vmem [shape: f32[32,1], index: 5, kind: input, shape index: {}]   ;;  %s1397_s6 = inlined_call_operand.vmem [shape: bf16[32,32], index: 6, kind: input, shape index: {}]   ;;  %s1398_s7 = inlined_call_operand.vmem [shape: bf16[32,32], index: 7, kind: input, shape index: {}]   ;;  %s1399_s8 = inlined_call_operand.vmem [shape: bf16[32,32], index: 8, kind: input, shape index: {}]   ;;  %s1400_s9 = inlined_call_operand.vmem [shape: bf16[32,32], index: 9, kind: input, shape index: {}]   ;;  %s1401_s10 = inlined_call_operand.vmem [shape: f32[32,1], index: 10, kind: input, shape index: {}, may-alias: {4,10}]   ;;  %s1402_s11 = inlined_call_operand.vmem [shape: bf16[2,32,64], index: 11, kind: output, shape index: {}]  }
   0x1 LB: > { %s984_s18 = sadd.s32 4294967295, %s1131_s17   ;;  %p988_p0 = scmp.ge.s32.totalorder %s1131_s17, 1  ;;  %s1131_s17 = sphi %s1194_s17, %s21_s17  }
   0x2   : > { %p356_p1 = scmp.lt.s32.totalorder %s1131_s17, 3 }
   0x4   : > { %p357_p2 = pnand %p988_p0, %p356_p1 }
   0x5   : > { %p405_p3 = scmp.lt.s32.totalorder (!%p357_p2), %s984_s18, 1 }
   0x6   : > { %360 = sbr.rel (%p357_p2) target bundleno = 857 (0x359), region = 64 }
   0xb   : > { %v437_v0 = vld [vmem:[%s1395_s4 + $0x10] sm:$0xff]  ;;  %v435_v1 = vld [vmem:[%s1395_s4] sm:$0xff]  ;;  %v1133_v2 = vmov 0   ;;  %s1410_s18 = smov (!%p405_p3, %s984_s18), 1  ;;  %v438_v5 = vld [vmem:[%s1395_s4 + $0x18] sm:$0xff]  ;;  %vm487_vm0 = vcmask 392192  }
   0xc   : > { %1102 = vset.pattern.permute.xlu0 %v1133_v2  ;;  %1103 = vset.pattern.permute.xlu1 %v1133_v2  ;;  %s1092_s23 = smul.u32 24, %s1410_s18  ;;  %v595_v3 = vld [vmem:[%s1396_s5 + $0x10] sm:$0xff]  ;;  %v436_v6 = vld [vmem:[%s1395_s4 + $0x8] sm:$0xff]  ;;  %v596_v8 = vld [vmem:[%s1396_s5 + $0x18] sm:$0xff]  ;;  %s990_s19 = sshll.u32 %s1410_s18, 2  ;;  %vm637_vm3 = vcmask 261120  }
   0xd   : > { %451 = vperm.xlu0 %1102, %v437_v0   ;;  %441 = vperm.xlu1 %1103, %v435_v1   ;;  %v593_v10 = vld [vmem:[%s1396_s5] sm:$0xff]  ;;  %v594_v11 = vld [vmem:[%s1396_s5 + $0x8] sm:$0xff]  ;;  %v835_v15 = vld [vmem:[%s1401_s10 + $0x10] sm:$0xff]  ;;  %s413_s24 = scalar_lea.vmem %s1392_s1, %s990_s19  ;;  %s1073_s29 = sshll.u32 %s1410_s18, 4 }
   0xe   : > { %1104 = vset.pattern.permute.xlu2 %v1133_v2  ;;  %s409_s28 = scalar_lea.vmem %s1391_s0, %s1092_s23  ;;  %v1075_v12 = vld [vmem:[%s1394_s3] sm:$0xff]  ;;  %v834_v14 = vld [vmem:[%s1401_s10 + $0x8] sm:$0xff]  ;;  %v836_v16 = vld [vmem:[%s1401_s10 + $0x18] sm:$0xff]  ;;  %s418_s13 = scalar_lea.vmem %s1393_s2, %s1073_s29 }
   0xf   : > { %609 = vperm.xlu2 %1104, %v595_v3   ;;  %v1079_v4 = vld [vmem:[%s409_s28 + $0x10] sm:$0xff]  ;;  %v1078_v7 = vld [vmem:[%s409_s28 + $0x8] sm:$0xff]  ;;  %v1077_v9 = vld [vmem:[%s409_s28] sm:$0xff]  ;;  %s423_s26 = scalar_lea.vmem %s1402_s11, %s1073_s29 }
  0x10   : > { %499 = vmatpush.bf16.msra.mxu0 %v1079_v4  ;;  %v833_v13 = vld [vmem:[%s1401_s10] sm:$0xff]  ;;  %v1076_v17 = vld [vmem:[%s1394_s3 + $0x8] sm:$0xff] }
  0x11   : > { %v1083_v47 = vld [vmem:[%s1398_s7 + $0x8] sm:$0xff]  ;;  %v1082_v50 = vld [vmem:[%s1398_s7] sm:$0xff] }
  0x12   : > { %v663_v55 = vld [vmem:[%s413_s24] sm:$0xf] }
  0x14   : > { %500 = vmatpush.bf16.msra.mxu0 %v1078_v7 }
  0x15   : > { %456 = vperm.xlu0 %1102, %v438_v5   ;;  %446 = vperm.xlu1 %1103, %v436_v6  }
  0x17   : > { %614 = vperm.xlu2 %1104, %v596_v8  }
  0x18   : > { %501 = vmatpush.bf16.msra.mxu0 %v1077_v9 }
  0x1b   : > { %1015 = vmatmul.msk.bf16.vlgmr.msra.gmra.mxu0 %vm487_vm0, %v1075_v12 }
  0x1c   : > { %689 = vmatpush.bf16.msrb.mxu0 %v1083_v47  ;;  %v1085_v47 = vld [vmem:[%s1399_s8 + $0x8] sm:$0xff] }
  0x1d   : > { %599 = vperm.xlu0 %1102, %v593_v10   ;;  %604 = vperm.xlu1 %1103, %v594_v11  }
  0x1f   : > { %839 = vperm.xlu2 %1104, %v833_v13  }
  0x20   : > { %690 = vmatpush.bf16.msrb.mxu0 %v1082_v50 }
  0x25   : > { %844 = vperm.xlu0 %1102, %v834_v14   ;;  %849 = vperm.xlu1 %1103, %v835_v15  }
  0x27   : > { %854 = vperm.xlu2 %1104, %v836_v16  }
  0x2b   : > { %1016 = vmatmul.msk.bf16.gmra.mxu0 %vm487_vm0, %v1076_v17 }
  0x3b   : > { %1039 = vmatmul.msk.bf16.vlgmr.msrb.gmra.mxu0 %vm637_vm3, %v663_v55 }
  0x69   : > { %v610_v1 = vpop.permute.xlu2 %609 }
  0x7f   : > { %v442_v18 = vpop.permute.xlu1 %441  ;;  %v452_v26 = vpop.permute.xlu0 %451 }
  0x87   : > { %v447_v22 = vpop.permute.xlu1 %446  ;;  %v457_v34 = vpop.permute.xlu0 %456 }
  0x98   : > { %v503_v19 = vpop.f32.mrf.mxu0 }
  0x99   : > { %v1250_v20 = vadd.f32 %v503_v19, %v442_v18 }
  0x9b   : > { %v1017_v21 = vmul.f32 -1.442695, %v1250_v20 }
  0x9d   : > { %1105 = vpow2.f32 %v1017_v21 }
  0xa0   : > { %v505_v23 = vpop.f32.mrf.mxu0 }
  0xa1   : > { %v1253_v24 = vadd.f32 %v505_v23, %v447_v22 }
  0xa3   : > { %v1018_v25 = vmul.f32 -1.442695, %v1253_v24  ;;  %v1106_v29 = vpop.eup %1105 }
  0xa4   : > { %v1261_v33 = vadd.f32 1.0, %v1106_v29 }
  0xa5   : > { %1107 = vpow2.f32 %v1018_v25 }
  0xa6   : > { %vm534_vm2 = vweird.f32 %v1261_v33  ;;  %v538_v63 = vand.u32 2147483647, %v1261_v33  ;;  %v540_v7 = vand.u32 2147483648, %v1261_v33 }
  0xa8   : > { %v508_v27 = vpop.f32.mrf.mxu0  ;;  %v541_v19 = vor.u32 1.1754944e-38, %v540_v7  ;;  %vm539_vm0 = vcmp.eq.f32.partialorder %v538_v63, 8.507059e+37 }
  0xa9   : > { %v1256_v28 = vadd.f32 %v508_v27, %v452_v26 }
  0xab   : > { %v1108_v30 = vpop.eup %1107  ;;  %v1019_v31 = vmul.f32 -1.442695, %v1256_v28 }
  0xac   : > { %v1259_v32 = vadd.f32 1.0, %v1108_v30 }
  0xad   : > { %1109 = vpow2.f32 %v1019_v31  ;;  %v615_v31 = vpop.permute.xlu2 %614 }
  0xae   : > { %1111 = vrcp.f32 %v1259_v32  ;;  %vm549_vm7 = vweird.f32 %v1259_v32  ;;  %v555_v0 = vand.u32 2147483648, %v1259_v32  ;;  %v553_v4 = vand.u32 2147483647, %v1259_v32 }
  0xaf   : > { %1113 = vrcp.f32 %v1261_v33 }
  0xb0   : > { %v510_v35 = vpop.f32.mrf.mxu0  ;;  %v556_v15 = vor.u32 1.1754944e-38, %v555_v0  ;;  %vm554_vm13 = vcmp.eq.f32.partialorder %v553_v4, 8.507059e+37 }
  0xb1   : > { %v1264_v36 = vadd.f32 %v510_v35, %v457_v34  ;;  %v605_v35 = vpop.permute.xlu1 %604 }
  0xb3   : > { %v1110_v37 = vpop.eup %1109  ;;  %v1020_v38 = vmul.f32 -1.442695, %v1264_v36 }
  0xb4   : > { %v527_v39 = vadd.f32 1.0, %v1110_v37  ;;  %v1268_v40 = vpop.eup %1111 }
  0xb5   : > { %1115 = vpow2.f32 %v1020_v38  ;;  %v1270_v41 = vpop.eup %1113  ;;  %v545_v42 = vmul.f32 %v1268_v40, %v1259_v32  ;;  %vm550_vm4 = vweird.f32 %v1268_v40  ;;  %v600_v38 = vpop.permute.xlu0 %599 }
  0xb6   : > { %1117 = vrcp.f32 %v527_v39  ;;  %v530_v44 = vmul.f32 %v1270_v41, %v1261_v33  ;;  %v568_v59 = vand.u32 2147483647, %v527_v39  ;;  %v570_v60 = vand.u32 2147483648, %v527_v39  ;;  %vm1308_vm9 = vmor %vm549_vm7, %vm550_vm4 }
  0xb7   : > { %v546_v48 = vsub.f32 1.0, %v545_v42  ;;  %vm564_vm5 = vweird.f32 %v527_v39  ;;  %vm535_vm6 = vweird.f32 %v1270_v41  ;;  %v1087_v42 = vld [vmem:[%s418_s13 + $0x8] sm:$0xff]  ;;  %vm799_vm4 = vcmask 1043456  }
  0xb8   : > { %v531_v51 = vsub.f32 1.0, %v530_v44  ;;  %vm569_vm10 = vcmp.eq.f32.partialorder %v568_v59, 8.507059e+37  ;;  %v571_v9 = vor.u32 1.1754944e-38, %v570_v60  ;;  %vm1319_vm12 = vmor %vm534_vm2, %vm535_vm6  ;;  %v1084_v44 = vld [vmem:[%s1399_s8] sm:$0xff]  ;;  %vm771_vm2 = vcmask 523264  }
  0xb9   : > { %v547_v53 = vmul.f32 %v1268_v40, %v546_v48  ;;  %vm900_vm6 = vcmask 519168  }
  0xba   : > { %v532_v56 = vmul.f32 %v1270_v41, %v531_v51 }
  0xbb   : > { %v1116_v43 = vpop.eup %1115  ;;  %v548_v61 = vadd.f32 %v1268_v40, %v547_v53 }
  0xbc   : > { %v1118_v45 = vpop.eup %1117  ;;  %v528_v46 = vadd.f32 1.0, %v1116_v43  ;;  %v533_v3 = vadd.f32 %v1270_v41, %v532_v56  ;;  %v1086_v43 = vld [vmem:[%s418_s13] sm:$0xff] }
  0xbd   : > { %v560_v49 = vmul.f32 %v1118_v45, %v527_v39  ;;  %vm565_vm1 = vweird.f32 %v1118_v45  ;;  %v552_v11 = vsel %vm1308_vm9, %v1268_v40, %v548_v61  ;;  %v692_v40 = vpop.f32.mrf.mxu0 }
  0xbe   : > { %1119 = vrcp.f32 %v528_v46  ;;  %vm1297_vm8 = vmor %vm564_vm5, %vm565_vm1  ;;  %v585_v10 = vand.u32 2147483648, %v528_v46  ;;  %v583_v13 = vand.u32 2147483647, %v528_v46  ;;  %v537_v17 = vsel %vm1319_vm12, %v1270_v41, %v533_v3 }
  0xbf   : > { %v561_v52 = vsub.f32 1.0, %v560_v49  ;;  %vm579_vm14 = vweird.f32 %v528_v46  ;;  %v557_v21 = vsel %vm554_vm13, %v556_v15, %v552_v11  ;;  %v542_v26 = vsel %vm539_vm0, %v541_v19, %v537_v17 }
  0xc0   : > { %v586_v22 = vor.u32 1.1754944e-38, %v585_v10  ;;  %vm584_vm1 = vcmp.eq.f32.partialorder %v583_v13, 8.507059e+37  ;;  %v590_v29 = vmul.f32 %v557_v21, %v1253_v24  ;;  %v589_v32 = vmul.f32 %v542_v26, %v1250_v20  ;;  %v1081_v24 = vld [vmem:[%s1397_s6 + $0x8] sm:$0xff] }
  0xc1   : > { %v562_v54 = vmul.f32 %v1118_v45, %v561_v52  ;;  %v751_v52 = vpack.c.bf16 %v692_v40, %v692_v40  ;;  %vm792_vm5 = vcmask 64512  }
  0xc2   : > { %v1334_v37 = vadd.f32 %v605_v35, %v590_v29  ;;  %v1338_v39 = vadd.f32 %v600_v38, %v589_v32  ;;  %v1089_v32 = vld [vmem:[%s1400_s9 + $0x8] sm:$0xff]  ;;  %v840_v35 = vpop.permute.xlu2 %839 }
  0xc3   : > { %v563_v57 = vadd.f32 %v1118_v45, %v562_v54 }
  0xc4   : > { %v1120_v58 = vpop.eup %1119  ;;  %v621_v20 = vpack.c.bf16 %v1334_v37, %v1338_v39 }
  0xc5   : > { %v575_v62 = vmul.f32 %v1120_v58, %v528_v46  ;;  %v567_v5 = vsel %vm1297_vm8, %v1118_v45, %v563_v57  ;;  %vm580_vm11 = vweird.f32 %v1120_v58  ;;  %v694_v41 = vpop.f32.mrf.mxu0 }
  0xc6   : > { %v572_v16 = vsel %vm569_vm10, %v571_v9, %v567_v5  ;;  %vm581_vm15 = vmor %vm579_vm14, %vm580_vm11 }
  0xc7   : > { %v576_v6 = vsub.f32 1.0, %v575_v62  ;;  %v591_v23 = vmul.f32 %v572_v16, %v1256_v28 }
  0xc9   : > { %v577_v12 = vmul.f32 %v1120_v58, %v576_v6  ;;  %v1330_v33 = vadd.f32 %v610_v1, %v591_v23 }
  0xcb   : > { %v578_v18 = vadd.f32 %v1120_v58, %v577_v12 }
  0xcd   : > { %v582_v25 = vsel %vm581_vm15, %v1120_v58, %v578_v18 }
  0xce   : > { %v587_v27 = vsel %vm584_vm1, %v586_v22, %v582_v25 }
  0xcf   : > { %v592_v30 = vmul.f32 %v587_v27, %v1264_v36  ;;  %v1080_v36 = vld [vmem:[%s1397_s6] sm:$0xff] }
  0xd1   : > { %v1332_v34 = vadd.f32 %v615_v31, %v592_v30  ;;  %v1088_v31 = vld [vmem:[%s1400_s9] sm:$0xff] }
  0xd3   : > { %v622_v28 = vpack.c.bf16 %v1332_v34, %v1330_v33 }
  0xd5   : > { %650 = vmatpush.bf16.msra.mxu1 %v622_v28  ;;  %1090 = vmatpush.bf16.msra.mxu3 %v622_v28 }
  0xd9   : > { %651 = vmatpush.bf16.msra.mxu1 %v621_v20  ;;  %1091 = vmatpush.bf16.msra.mxu3 %v621_v20 }
  0xdc   : > { %1030 = vmatmul.msk.bf16.vlgmr.msra.gmra.mxu3 %vm637_vm3, %v1081_v24  ;;  %1029 = vmatmul.msk.bf16.vlgmr.msra.gmra.mxu1 %vm637_vm3, %v1080_v36  ;;  %v845_v36 = vpop.permute.xlu0 %844 }
  0xdd   : > { %738 = vmatpush.bf16.msrb.mxu3 %v1087_v42 }
  0xe1   : > { %739 = vmatpush.bf16.msrb.mxu3 %v1086_v43 }
  0xec   : > { %1056 = vmatmul.msk.bf16.vlgmr.msrb.gmra.mxu3 %vm637_vm3, %v1084_v44  ;;  %v850_v44 = vpop.permute.xlu1 %849 }
  0xfc   : > { %1057 = vmatmul.msk.bf16.gmra.mxu3 %vm637_vm3, %v1085_v47 }
 0x159   : > { %v653_v45 = vpop.f32.mrf.mxu1 }
 0x15f   : > { %v658_v46 = vpop.f32.mrf.mxu3 }
 0x161   : > { %v655_v50 = vpop.f32.mrf.mxu1 }
 0x162   : > { %v752_v51 = vpack.c.bf16 %v655_v50, %v653_v45 }
 0x167   : > { %v660_v48 = vpop.f32.mrf.mxu3 }
 0x168   : > { %v753_v49 = vpack.c.bf16 %v660_v48, %v658_v46  ;;  %v855_v48 = vpop.permute.xlu2 %854 }
 0x16a   : > { %763 = vmatpush.bf16.msra.mxu2 %v753_v49 }
 0x16e   : > { %764 = vmatpush.bf16.msra.mxu2 %v752_v51 }
 0x16f   : > { %v741_v63 = vpop.f32.mrf.mxu3 }
 0x171   : > { %1058 = vmatmul.msk.bf16.vlgmr.msra.gmra.mxu2 %vm637_vm3, %v751_v52 }
 0x177   : > { %v743_v2 = vpop.f32.mrf.mxu3 }
 0x178   : > { %v789_v7 = vpack.c.bf16 %v743_v2, %v741_v63 }
 0x17f   : > { %v746_v8 = vpop.f32.mrf.mxu3 }
 0x187   : > { %v748_v9 = vpop.f32.mrf.mxu3 }
 0x188   : > { %v790_v10 = vpack.c.bf16 %v748_v9, %v746_v8 }
 0x1f4   : > { %v766_v53 = vpop.f32.mrf.mxu2 }
 0x1f5   : > { %v770_v54 = vmul.f32 0.17677669, %v766_v53 }
 0x1f7   : > { %v772_v55 = vsel %vm771_vm2, %v770_v54, -inf }
 0x1f8   : > { %v773_v56 = vrot.slane %v772_v55, 4 }
 0x1fa   : > { %v774_v57 = vmax.f32 %v772_v55, %v773_v56 }
 0x1fc   : > { %v775_v58 = vrot.slane %v774_v57, 2  ;;  %v768_v59 = vpop.f32.mrf.mxu2 }
 0x1fe   : > { %v776_v60 = vmax.f32 %v774_v57, %v775_v58 }
 0x200   : > { %v777_v61 = vrot.slane %v776_v60, 1 }
 0x202   : > { %v778_v62 = vmax.f32 %v776_v60, %v777_v61 }
 0x204   : > { %v779_v0 = vsub.f32 %v770_v54, %v778_v62 }
 0x206   : > { %v780_v1 = vmul.f32 1.442695, %v779_v0 }
 0x208   : > { %1121 = vpow2.f32 %v780_v1 }
 0x20e   : > { %v1122_v3 = vpop.eup %1121 }
 0x20f   : > { %v782_v4 = vsel %vm771_vm2, %v1122_v3, 0.0  ;;  %v791_v5 = vpack.c.bf16 %v1122_v3, %v1122_v3 }
 0x210   : > { %v783_v11 = vrot.slane %v782_v4, 4 }
 0x211   : > { %v801_v6 = vsel %vm799_vm4, %v791_v5, 0 }
 0x212   : > { %810 = vmatpush.bf16.msrb.mxu1 %v801_v6  ;;  %v784_v12 = vadd.f32 %v783_v11, %v782_v4 }
 0x214   : > { %v785_v14 = vrot.slane %v784_v12, 2 }
 0x215   : > { %1059 = vmatmul.msk.bf16.vlgmr.msrb.gmra.mxu1 %vm792_vm5, %v789_v7 }
 0x216   : > { %v786_v15 = vadd.f32 %v785_v14, %v784_v12 }
 0x218   : > { %v787_v17 = vrot.slane %v786_v15, 1 }
 0x21a   : > { %v788_v18 = vadd.f32 %v787_v17, %v786_v15 }
 0x21c   : > { %1123 = vrcp.f32 %v788_v18 }
 0x222   : > { %v1124_v21 = vpop.eup %1123 }
 0x225   : > { %1060 = vmatmul.msk.bf16.gmra.mxu1 %vm792_vm5, %v790_v10 }
 0x292   : > { %v812_v13 = vpop.f32.mrf.mxu1 }
 0x293   : > { %v823_v29 = vmul.f32 %v1124_v21, %v812_v13 }
 0x29a   : > { %v814_v16 = vpop.f32.mrf.mxu1 }
 0x29b   : > { %v824_v26 = vmul.f32 %v1124_v21, %v814_v16 }
 0x29d   : > { %v831_v30 = vpack.c.bf16 %v824_v26, %v823_v29 }
 0x2a2   : > { %v817_v19 = vpop.f32.mrf.mxu1 }
 0x2a3   : > { %v825_v23 = vmul.f32 %v1124_v21, %v817_v19 }
 0x2aa   : > { %v819_v22 = vpop.f32.mrf.mxu1 }
 0x2ab   : > { %v826_v25 = vmul.f32 %v1124_v21, %v819_v22 }
 0x2ad   : > { %v832_v27 = vpack.c.bf16 %v826_v25, %v825_v23 }
 0x2af   : > { %879 = vmatpush.bf16.msrb.mxu2 %v832_v27 }
 0x2b3   : > { %880 = vmatpush.bf16.msrb.mxu2 %v831_v30 }
 0x2b6   : > { %1069 = vmatmul.msk.bf16.vlgmr.msrb.gmra.mxu2 %vm637_vm3, %v1088_v31 }
 0x2c6   : > { %1070 = vmatmul.msk.bf16.gmra.mxu2 %vm637_vm3, %v1089_v32 }
 0x339   : > { %v882_v28 = vpop.f32.mrf.mxu2 }
 0x33a   : > { %v883_v38 = vadd.f32 %v882_v28, %v840_v35 }
 0x33c   : > { %v892_v20 = vadd.f32 %v883_v38, %v1338_v39 }
 0x33e   : > { %v896_v24 = vpack.c.bf16 %v892_v20, %v892_v20 }
 0x340   : > { %901 = vst.msk [vmem:[%s423_s26] sm:$0xf] %vm900_vm6, %v896_v24 }
 0x341   : > { %v884_v40 = vpop.f32.mrf.mxu2 }
 0x342   : > { %v885_v41 = vadd.f32 %v884_v40, %v845_v36 }
 0x344   : > { %v893_v42 = vadd.f32 %v885_v41, %v1334_v37 }
 0x346   : > { %v897_v43 = vpack.c.bf16 %v893_v42, %v893_v42 }
 0x348   : > { %902 = vst.msk [vmem:[%s423_s26 + $0x4] sm:$0xf] %vm900_vm6, %v897_v43 }
 0x349   : > { %v887_v45 = vpop.f32.mrf.mxu2 }
 0x34a   : > { %v888_v39 = vadd.f32 %v887_v45, %v850_v44 }
 0x34c   : > { %v894_v46 = vadd.f32 %v888_v39, %v1330_v33 }
 0x34e   : > { %v898_v47 = vpack.c.bf16 %v894_v46, %v894_v46 }
 0x350   : > { %903 = vst.msk [vmem:[%s423_s26 + $0x8] sm:$0xf] %vm900_vm6, %v898_v47 }
 0x351   : > { %v889_v49 = vpop.f32.mrf.mxu2 }
 0x352   : > { %v890_v50 = vadd.f32 %v889_v49, %v855_v48 }
 0x354   : > { %v895_v51 = vadd.f32 %v890_v50, %v1332_v34 }
 0x356   : > { %v899_v52 = vpack.c.bf16 %v895_v51, %v895_v51 }
 0x358   : > { %904 = vst.msk [vmem:[%s423_s26 + $0xc] sm:$0xf] %vm900_vm6, %v899_v52 }
 0x359 PF: > { %s21_s17 = sadd.s32 1, %s1131_s17  }
 0x35a   : > { %p18_p4 = scmp.ge.s32.totalorder %s21_s17, 4  }
 0x35c   :  { %20 = sbr.rel (!%p18_p4) target bundleno = 1 (0x1), region = 100 }

// kernel: _forward_impl.8
= control target key start
LH: loop header
LB: loop body
LE: loop exit
PB: predicated region body
PF: predicated region fallthrough
CT: control target
= control target key end

     0   :  { %v320_v5 = vmov 0   ;;  %vm176_vm0 = vcmask 261120   ;;  %s412_s1 = inlined_call_operand.vmem [shape: bf16[288,128], index: 1, kind: input, shape index: {}]   ;;  %s413_s0 = inlined_call_operand.vmem [shape: bf16[4,288], index: 0, kind: input, shape index: {}]   ;;  %s414_s2 = inlined_call_operand.vmem [shape: f32[4,1], index: 2, kind: input, shape index: {}]   ;;  %s415_s3 = inlined_call_operand.vmem [shape: f32[4,128], index: 3, kind: input, shape index: {}]   ;;  %s416_s4 = inlined_call_operand.vmem [shape: f32[4,128], index: 4, kind: output, shape index: {}]  }
   0x1   :  { %v307_v0 = vld [vmem:[%s412_s1 + $0x38] sm:$0xff]  ;;  %v306_v2 = vld [vmem:[%s412_s1 + $0x30] sm:$0xff]  ;;  %v317_v4 = vld [vmem:[%s412_s1 + $0x88] sm:$0xff]  ;;  %319 = vset.pattern.permute.xlu0 %v320_v5 }
   0x2   :  { %v315_v1 = vld [vmem:[%s412_s1 + $0x78] sm:$0xff]  ;;  %179 = vmatpush.bf16.msra.mxu0 %v307_v0  ;;  %v314_v3 = vld [vmem:[%s412_s1 + $0x70] sm:$0xff]  ;;  %211 = vmatpush.bf16.msra.mxu2 %v317_v4  ;;  %v316_v6 = vld [vmem:[%s412_s1 + $0x80] sm:$0xff] }
   0x3   :  { %192 = vmatpush.bf16.msra.mxu1 %v315_v1  ;;  %v18_v7 = vld [vmem:[%s413_s0] sm:$0x3f]  ;;  %v305_v8 = vld [vmem:[%s412_s1 + $0x28] sm:$0xff]  ;;  %v303_v14 = vld [vmem:[%s412_s1 + $0x18] sm:$0xff] }
   0x4   :  { %62 = vst [vmem:[#allocation1] ss:$4 sm:$0xff] %v18_v7  ;;  %v313_v9 = vld [vmem:[%s412_s1 + $0x68] sm:$0xff]  ;;  %v55_v10 = vld [vmem:[%s414_s2] sm:$0xf]  ;;  %v311_v15 = vld [vmem:[%s412_s1 + $0x58] sm:$0xff] }
   0x5   :  { %58 = vperm.xlu0 %319, %v55_v10   ;;  %v304_v11 = vld [vmem:[%s412_s1 + $0x20] sm:$0xff]  ;;  %v302_v16 = vld [vmem:[%s412_s1 + $0x10] sm:$0xff]  ;;  %v301_v18 = vld [vmem:[%s412_s1 + $0x8] sm:$0xff] }
   0x6   :  { %180 = vmatpush.bf16.msra.mxu0 %v306_v2  ;;  %212 = vmatpush.bf16.msra.mxu2 %v316_v6  ;;  %v312_v12 = vld [vmem:[%s412_s1 + $0x60] sm:$0xff]  ;;  %v310_v17 = vld [vmem:[%s412_s1 + $0x50] sm:$0xff]  ;;  %v309_v19 = vld [vmem:[%s412_s1 + $0x48] sm:$0xff] }
   0x7   :  { %193 = vmatpush.bf16.msra.mxu1 %v314_v3  ;;  %v300_v20 = vld [vmem:[%s412_s1] sm:$0xff] }
   0x8   :  { %v308_v21 = vld [vmem:[%s412_s1 + $0x40] sm:$0xff] }
   0x9   :  { %v218_v32 = vld [vmem:[%s415_s3] sm:$0xf] }
   0xa   :  { %181 = vmatpush.bf16.msra.mxu0 %v305_v8 }
   0xb   :  { %194 = vmatpush.bf16.msra.mxu1 %v313_v9  ;;  %v65_v13 = vld.sshfl [vmem:[#allocation1 + $0x10] sm:$0xff pattern:$0x73625140]  ;;  %v63_v22 = vld.sshfl [vmem:[#allocation1] sm:$0xff pattern:$0x73625140] }
   0xc   :  { %299 = vmatmul.msk.bf16.vlgmr.msra.gmra.mxu2 %vm176_vm0, %v65_v13  ;;  %v64_v23 = vld.sshfl [vmem:[#allocation1 + $0x8] sm:$0xff pattern:$0x73625140] }
   0xe   :  { %182 = vmatpush.bf16.msra.mxu0 %v304_v11 }
   0xf   :  { %195 = vmatpush.bf16.msra.mxu1 %v312_v12 }
  0x12   :  { %183 = vmatpush.bf16.msra.mxu0 %v303_v14 }
  0x13   :  { %196 = vmatpush.bf16.msra.mxu1 %v311_v15 }
  0x16   :  { %184 = vmatpush.bf16.msra.mxu0 %v302_v16 }
  0x17   :  { %197 = vmatpush.bf16.msra.mxu1 %v310_v17 }
  0x1a   :  { %185 = vmatpush.bf16.msra.mxu0 %v301_v18 }
  0x1b   :  { %198 = vmatpush.bf16.msra.mxu1 %v309_v19 }
  0x1e   :  { %186 = vmatpush.bf16.msra.mxu0 %v300_v20 }
  0x1f   :  { %199 = vmatpush.bf16.msra.mxu1 %v308_v21 }
  0x21   :  { %187 = vmatmul.bf16.vlgmr.msra.gmra.mxu0 %v63_v22 }
  0x22   :  { %200 = vmatmul.bf16.vlgmr.msra.gmra.mxu1 %v64_v23 }
  0x77   :  { %v59_v26 = vpop.permute.xlu0 %58 }
  0x8f   :  { %v214_v24 = vpop.f32.mrf.mxu2 }
  0x97   :  { %v216_v25 = vpop.f32.mrf.mxu2 }
  0x9e   :  { %v188_v27 = vpop.f32.mrf.mxu0 }
  0x9f   :  { %v201_v28 = vpop.f32.mrf.mxu1  ;;  %v189_v29 = vadd.f32 %v188_v27, %v59_v26 }
  0xa1   :  { %v202_v30 = vadd.f32 %v201_v28, %v189_v29 }
  0xa3   :  { %v215_v31 = vadd.f32 %v214_v24, %v202_v30 }
  0xa5   :  { %v219_v33 = vmul.f32 0.99766725, %v215_v31 }
  0xa6   :  { %v190_v34 = vpop.f32.mrf.mxu0 }
  0xa7   :  { %v203_v35 = vpop.f32.mrf.mxu1  ;;  %v220_v36 = vsub.f32 %v218_v32, %v219_v33 }
  0xa9   :  { %v221_v37 = vmul.f32 14.648813, %v220_v36 }
  0xab   :  { %222 = vst [vmem:[%s416_s4] sm:$0xf] %v221_v37 }

// kernel: _forward_impl.9
= control target key start
LH: loop header
LB: loop body
LE: loop exit
PB: predicated region body
PF: predicated region fallthrough
CT: control target
= control target key end

     0   :  { %s495_s12 = smov 0   ;;  %s497_s13 = smov 0   ;;  %s553_s0 = inlined_call_operand.vmem [shape: bf16[3,48], index: 0, kind: input, shape index: {}]   ;;  %s554_s1 = inlined_call_operand.vmem [shape: bf16[48,512], index: 1, kind: input, shape index: {}]   ;;  %s555_s2 = inlined_call_operand.vmem [shape: f32[3,1], index: 2, kind: input, shape index: {}]   ;;  %s556_s3 = inlined_call_operand.vmem [shape: f32[3,512], index: 3, kind: output, shape index: {}]  }
   0x1   :  { %s499_s14 = smov 0  }
   0x2 LB: > { %s376_s15 = sadd.s32 4294967295, %s472_s14   ;;  %s512_s16 = sadd.s32 1, %s472_s14   ;;  %s472_s14 = sphi %s499_s14, %s559_s14   ;;  %s468_s13 = sphi %s497_s13, %s558_s13   ;;  %s464_s12 = sphi %s495_s12, %s557_s12  }
   0x3   : > { %s38_s17 = ssub.s32 %s472_s14, %s512_s16  ;;  %s41_s18 = sadd.s32 1, %s468_s13 }
   0x4   : > { %p39_p0 = scmp.eq.s32.totalorder %s38_s17, 0  ;;  %p48_p1 = scmp.ne.s32.totalorder %s468_s13, %s464_s12 }
   0x5   : > { %p49_p2 = scmp.eq.s32.totalorder %s472_s14, 0  ;;  %p379_p4 = scmp.ge.s32.totalorder %s472_s14, 2 }
   0x6   : > { %s521_s19 = scalar_select %p39_p0, %s468_s13, %s41_s18  }
   0x7   : > { %p50_p3 = por %p49_p2, %p48_p1  ;;  %127 = sbr.rel (%p379_p4) target bundleno = 22 (0x16), region = 24 }
   0xc   : > { %130 = sbr.rel (!%p50_p3) target bundleno = 22 (0x16), region = 28  ;;  %s132_s20 = sand.u32 (%p50_p3), 1, %s468_s13  }
   0xd   : > { %s415_s21 = sshll.u32 (%p50_p3), %s472_s14, 3  ;;  %s422_s22 = smul.u32 (%p50_p3), 48, %s132_s20 }
   0xe   : > { %s137_s25 = scalar_lea.vmem (%p50_p3), %s554_s1, %s415_s21 }
   0xf   : > { %v176_v0 = vld [vmem:[%s137_s25] sm:$0xff] (%p50_p3)  ;;  %v178_v1 = vld [vmem:[%s137_s25 + $0x10] sm:$0xff] (%p50_p3)  ;;  %s134_s26 = scalar_lea.vmem (%p50_p3), [#allocation2], %s422_s22 }
  0x10   : > { %v180_v2 = vld [vmem:[%s137_s25 + $0x20] sm:$0xff] (%p50_p3)  ;;  %177 = vst [vmem:[%s134_s26] sm:$0xff] (%p50_p3), %v176_v0  ;;  %v182_v3 = vld [vmem:[%s137_s25 + $0x30] sm:$0xff] (%p50_p3) }
  0x11   : > { %179 = vst [vmem:[%s134_s26 + $0x8] sm:$0xff] %v178_v1  ;;  %v184_v4 = vld [vmem:[%s137_s25 + $0x40] sm:$0xff]  ;;  %v186_v5 = vld [vmem:[%s137_s25 + $0x50] sm:$0xff] }
  0x12   : > { %181 = vst [vmem:[%s134_s26 + $0x10] sm:$0xff] %v180_v2 }
  0x13   : > { %183 = vst [vmem:[%s134_s26 + $0x18] sm:$0xff] %v182_v3 }
  0x14   : > { %185 = vst [vmem:[%s134_s26 + $0x20] sm:$0xff] %v184_v4 }
  0x15   : > { %187 = vst [vmem:[%s134_s26 + $0x28] sm:$0xff] %v186_v5 }
  0x16 PF: > { %p382_p5 = scmp.ge.s32.totalorder %s472_s14, 1  ;;  %p192_p6 = scmp.lt.s32.totalorder %s472_s14, 3 }
  0x18   : > { %p193_p7 = pnand %p382_p5, %p192_p6 }
  0x19   : > { %s199_s27 = sand.u32 (!%p193_p7), 1, %s464_s12   ;;  %s383_s7 = sshll.u32 (!%p193_p7), %s376_s15, 1 }
  0x1a   : > { %196 = sbr.rel (%p193_p7) target bundleno = 180 (0xb4), region = 66  ;;  %p224_p8 = scmp.lt.s32.totalorder (!%p193_p7), %s383_s7, 3 }
  0x1b   : > { %s423_s28 = smul.u32 (!%p193_p7), 48, %s199_s27 }
  0x1d   : > { %s201_s4 = scalar_lea.vmem (!%p193_p7), [#allocation2], %s423_s28 }
  0x1f   : > { %v474_v6 = vmov 0   ;;  %v237_v7 = vld [vmem:[%s555_s2] sm:$0x7]  ;;  %v421_v9 = vld [vmem:[%s201_s4 + $0x24] sm:$0xf0]  ;;  %vm273_vm0 = vcmask 392192  }
  0x20   : > { %449 = vset.pattern.permute.xlu0 %v474_v6  ;;  %v403_v8 = vld [vmem:[%s201_s4 + $0x20] sm:$0xf]  ;;  %v420_v10 = vld [vmem:[%s201_s4 + $0x24] sm:$0xf]  ;;  %v405_v12 = vld [vmem:[%s201_s4 + $0x28] sm:$0xf0] }
  0x21   : > { %240 = vperm.xlu0 %449, %v237_v7   ;;  %v404_v11 = vor.u32 %v421_v9, %v403_v8  ;;  %v395_v13 = vld [vmem:[%s201_s4 + $0x10] sm:$0xf]  ;;  %v419_v14 = vld [vmem:[%s201_s4 + $0x14] sm:$0xf0]  ;;  %v408_v15 = vor.u32 %v420_v10, %v405_v12  ;;  %v418_v16 = vld [vmem:[%s201_s4 + $0x14] sm:$0xf] }
  0x22   : > { %v397_v17 = vld [vmem:[%s201_s4 + $0x18] sm:$0xf0]  ;;  %v396_v18 = vor.u32 %v419_v14, %v395_v13  ;;  %v387_v20 = vld [vmem:[%s201_s4] sm:$0xf]  ;;  %v417_v21 = vld [vmem:[%s201_s4 + $0x4] sm:$0xf0] }
  0x23   : > { %282 = vmatpush.bf16.msra.mxu0 %v404_v11  ;;  %295 = vmatpush.bf16.msra.mxu1 %v408_v15  ;;  %v400_v19 = vor.u32 %v418_v16, %v397_v17  ;;  %v416_v22 = vld [vmem:[%s201_s4 + $0x4] sm:$0xf]  ;;  %v389_v23 = vld [vmem:[%s201_s4 + $0x8] sm:$0xf0]  ;;  %v388_v24 = vor.u32 %v417_v21, %v387_v20  ;;  %v230_v26 = vld [vmem:[%s553_s0] sm:$0x3] }
  0x24   : > { %v392_v25 = vor.u32 %v416_v22, %v389_v23  ;;  %s561_s7 = smov (!%p224_p8, %s383_s7), 3  ;;  %vm310_vm1 = vcmask 1043456  }
  0x25   : > { %s384_s8 = sshll.u32 %s561_s7, 2 }
  0x26   : > { %s227_s11 = scalar_lea.vmem %s556_s3, %s384_s8 }
  0x27   : > { %283 = vmatpush.bf16.msra.mxu0 %v396_v18  ;;  %296 = vmatpush.bf16.msra.mxu1 %v400_v19 }
  0x2b   : > { %284 = vmatpush.bf16.msra.mxu0 %v388_v24  ;;  %297 = vmatpush.bf16.msra.mxu1 %v392_v25 }
  0x2e   : > { %409 = vmatmul.msk.bf16.vlgmr.msra.gmra.mxu0 %vm273_vm0, %v230_v26  ;;  %410 = vmatmul.msk.bf16.vlgmr.msra.gmra.mxu1 %vm273_vm0, %v230_v26 }
  0x93   : > { %v241_v27 = vpop.permute.xlu0 %240 }
  0xab   : > { %v286_v28 = vpop.f32.mrf.mxu0  ;;  %v299_v29 = vpop.f32.mrf.mxu1 }
  0xac   : > { %v287_v30 = vadd.f32 %v286_v28, %v241_v27  ;;  %v300_v31 = vadd.f32 %v299_v29, %v241_v27 }
  0xae   : > { %v412_v32 = vclamps-f32 %v300_v31, 1.0  ;;  %v411_v33 = vclamps-f32 %v287_v30, 1.0 }
  0xb0   : > { %v309_v34 = vrot.slane %v412_v32, 4 }
  0xb2   : > { %v311_v35 = vsel %vm310_vm1, %v411_v33, %v309_v34 }
  0xb3   : > { %v288_v36 = vpop.f32.mrf.mxu0  ;;  %313 = vst [vmem:[%s227_s11] sm:$0x77] %v311_v35  ;;  %v301_v37 = vpop.f32.mrf.mxu1 }
  0xb4 PF: > { %p10_p9 = scmp.ge.s32.totalorder %s512_s16, 4   ;;  %s557_s12 = smov %s468_s13 }
  0xb5   : > { %s558_s13 = smov %s521_s19  ;;  %s559_s14 = smov %s512_s16 }
  0xb6   :  { %12 = sbr.rel (!%p10_p9) target bundleno = 2 (0x2), region = 105 }

</bundles_post_ra>
